<compile_context>
chip_gen: v7x
topology: tpu7x:2x2x1
jax: 0.10.0
libtpu: 0.0.40
codegen_flags: <defaults>
</compile_context>

<pallas_src>
import math

import jax
import jax.numpy as jnp
from jax.experimental import pallas as pl
from jax.experimental.pallas import tpu as pltpu

# Small, module-consistent shapes (vec_size scaled 768 -> 32 for the synthetic test).
# NOTE: at real sizes, batch more rows per call (B*S >= 128, >=256 preferred on v6e/v7x)
# and pad D/3D/F to multiples of 128/256 so the MXU is actually filled.
B, S, D, H, F, L, V = 2, 8, 32, 4, 64, 2, 50
DH = D // H
SCALE = 1.0 / math.sqrt(DH)

# Lane-aligned per-layer bias / LayerNorm slab: [L, 8, 128], one field per sublane row,
# every field starting at lane 0.
ROW_BQKV, ROW_BO, ROW_G1, ROW_BE1, ROW_BF1, ROW_BF2, ROW_G2, ROW_BE2 = range(8)
VEC_ROWS, VEC_LANES = 8, 128

HEAD_PAD = 128  # lane-dense padded width of the 2-way classification head


# ---------------- in-kernel numerics helpers (f32) ----------------
def _softmax(x):
    m = jnp.max(x, axis=-1, keepdims=True)
    e = jnp.exp(x - m)
    return e * pl.reciprocal(jnp.sum(e, axis=-1, keepdims=True), approx=True)


def _layernorm(x, g, b, eps=1e-12):
    mu = jnp.mean(x, axis=-1, keepdims=True)
    var = jnp.mean((x - mu) ** 2, axis=-1, keepdims=True)
    return (x - mu) * jax.lax.rsqrt(var + eps) * g + b


def _erf(x):
    # Abramowitz & Stegun 7.1.26 polynomial erf (max abs error ~1.5e-7).
    # The divide is routed through pl.reciprocal (EUP slot) per the v5e feedback.
    ax = jnp.abs(x)
    t = pl.reciprocal(1.0 + 0.3275911 * ax, approx=False)
    poly = ((((1.061405429 * t - 1.453152027) * t + 1.421413741) * t
             - 0.284496736) * t + 0.254829592) * t
    y = 1.0 - poly * jnp.exp(-ax * ax)
    return jnp.where(x >= 0, y, -y)


def _gelu(x):
    # exact (erf-based) GELU, matching torch.nn.GELU / HF BERT default
    return 0.5 * x * (1.0 + _erf(x * 0.7071067811865476))


# ---------------- per-layer Pallas kernel (grid over layers) ----------------
def encoder_layer_kernel(x_ref, wqkv_ref, wo_ref, wf1_ref, wf2_ref, vec_ref,
                         wh_ref, bh_ref, o_ref, h_ref):
    """One BERT encoder layer per grid step; hidden state carried in VMEM scratch.

    At l == L-1 also applies POS(0) ([CLS] row per batch element) + Linear(D, 2)
    (lane-padded to 128) and writes the output slab.
    """
    l = pl.program_id(0)

    @pl.when(l == 0)
    def _():
        h_ref[...] = x_ref[...]                                            # [B*S, D] f32

    x = h_ref[...]                                                         # [B*S, D] f32

    wqkv = wqkv_ref[0]                                                     # [D, 3D] bf16 (Q third pre-scaled)
    w_o = wo_ref[0]                                                        # [D, D]  bf16
    w_f1 = wf1_ref[0]                                                      # [D, F]  bf16
    w_f2 = wf2_ref[0]                                                      # [F, D]  bf16
    vec = vec_ref[0]                                                       # [8, 128] f32, lane-aligned fields
    b_qkv = vec[ROW_BQKV:ROW_BQKV + 1, 0:3 * D]                            # [1, 3D]
    b_o = vec[ROW_BO:ROW_BO + 1, 0:D]
    g1 = vec[ROW_G1:ROW_G1 + 1, 0:D]
    be1 = vec[ROW_BE1:ROW_BE1 + 1, 0:D]
    b_f1 = vec[ROW_BF1:ROW_BF1 + 1, 0:F]
    b_f2 = vec[ROW_BF2:ROW_BF2 + 1, 0:D]
    g2 = vec[ROW_G2:ROW_G2 + 1, 0:D]
    be2 = vec[ROW_BE2:ROW_BE2 + 1, 0:D]

    # Fused QKV projection for the whole batch: one [B*S,D] x [D,3D] MXU matmul.
    qkv = jnp.dot(x.astype(jnp.bfloat16), wqkv,
                  preferred_element_type=jnp.float32) + b_qkv              # [B*S, 3D] f32
    qkv3 = qkv.reshape(B, S, 3 * D)                                        # leading-dim split (no relayout)

    # Multi-head self-attention, batched over B with 3-D einsums (one score matmul,
    # one softmax, one PV matmul per head -- no per-batch-element slicing).
    head_parts = []
    for h in range(H):                                                     # short static unroll over heads
        c0 = h * DH
        qh = qkv3[:, :, c0:c0 + DH]                                        # [B, S, DH] (scale folded into Wq)
        kh = qkv3[:, :, D + c0:D + c0 + DH]
        vh = qkv3[:, :, 2 * D + c0:2 * D + c0 + DH]
        s = jnp.einsum('bqd,bkd->bqk', qh, kh,
                       preferred_element_type=jnp.float32)                 # [B, S, S]
        p = _softmax(s)
        head_parts.append(jnp.einsum('bqk,bkd->bqd', p, vh,
                                     preferred_element_type=jnp.float32))  # [B, S, DH]
    ctx = jnp.concatenate(head_parts, axis=-1).reshape(B * S, D)           # [B*S, D]

    attn = jnp.dot(ctx.astype(jnp.bfloat16), w_o,
                   preferred_element_type=jnp.float32) + b_o
    h1 = _layernorm(x + attn, g1, be1)

    ff = _gelu(jnp.dot(h1.astype(jnp.bfloat16), w_f1,
                       preferred_element_type=jnp.float32) + b_f1)         # [B*S, F]
    ff = jnp.dot(ff.astype(jnp.bfloat16), w_f2,
                 preferred_element_type=jnp.float32) + b_f2                # [B*S, D]
    x_new = _layernorm(h1 + ff, g2, be2)
    h_ref[...] = x_new                                                     # carry to next layer

    @pl.when(l == L - 1)
    def _():
        # POS(0): [CLS] row per batch element via reshape (no per-batch slice+concat),
        # then Linear(D, 2) lane-padded to 128 (lane-dense store; wrapper slices [:, :2]).
        cls = x_new.reshape(B, S, D)[:, 0:1, :].reshape(B, D)              # [B, D]
        o_ref[...] = (jnp.dot(cls.astype(jnp.bfloat16), wh_ref[...],
                              preferred_element_type=jnp.float32)
                      + bh_ref[...])                                       # [B, 128]


# ---------------- wrapper ----------------
def encoder_model_forward(token_ids, params):
    # Plain-JAX glue: embedding lookup (stands in for tokenizer + BERT embeddings).
    h = params["embedding"][token_ids].astype(jnp.float32).reshape(B * S, D)
    out = pl.pallas_call(
        encoder_layer_kernel,
        out_shape=jax.ShapeDtypeStruct((B, HEAD_PAD), jnp.float32),
        grid_spec=pltpu.PrefetchScalarGridSpec(
            num_scalar_prefetch=0,
            grid=(L,),
            in_specs=[
                pl.BlockSpec((B * S, D), lambda l: (0, 0)),                # hidden (resident)
                pl.BlockSpec((1, D, 3 * D), lambda l: (l, 0, 0)),          # per-layer W_qkv
                pl.BlockSpec((1, D, D), lambda l: (l, 0, 0)),              # per-layer W_o
                pl.BlockSpec((1, D, F), lambda l: (l, 0, 0)),              # per-layer W_ff1
                pl.BlockSpec((1, F, D), lambda l: (l, 0, 0)),              # per-layer W_ff2
                pl.BlockSpec((1, VEC_ROWS, VEC_LANES), lambda l: (l, 0, 0)),  # bias/LN slab
                pl.BlockSpec((D, HEAD_PAD), lambda l: (0, 0)),             # head weight (resident)
                pl.BlockSpec((1, HEAD_PAD), lambda l: (0, 0)),             # head bias (resident)
            ],
            out_specs=pl.BlockSpec((B, HEAD_PAD), lambda l: (0, 0)),
            scratch_shapes=[pltpu.VMEM((B * S, D), jnp.float32)],          # carried hidden state
        ),
        compiler_params=pltpu.CompilerParams(
            dimension_semantics=("arbitrary",),       # layers are sequential
            vmem_limit_bytes=32 * 1024 * 1024,
        ),
    )(h, params["w_qkv"], params["w_o"], params["w_f1"], params["w_f2"],
      params["vec"], params["w_head"], params["b_head"])
    return out[:, :2]                                                      # [B, 2] logits


encoder_model_forward = jax.jit(encoder_model_forward)


# ---------------- deterministic parameter init (packed / aligned layout) ----------------
def init_params(key):
    keys = jax.random.split(key, L + 2)

    def w(kk, shp):
        return jax.random.normal(kk, shp, jnp.float32) * 0.02

    embedding = w(keys[0], (V, D))

    wqkv_l, wo_l, wf1_l, wf2_l, vec_l = [], [], [], [], []
    for l in range(L):
        k = jax.random.split(keys[1 + l], 6)
        # Fold 1/sqrt(DH) into the Q projection (weight-side fold, free at runtime).
        wq = w(k[0], (D, D)) * SCALE
        wk, wv = w(k[1], (D, D)), w(k[2], (D, D))
        wqkv_l.append(jnp.concatenate([wq, wk, wv], axis=1))               # [D, 3D]
        wo_l.append(w(k[3], (D, D)))
        wf1_l.append(w(k[4], (D, F)))
        wf2_l.append(w(k[5], (F, D)))

        # Lane-aligned bias / LayerNorm slab: one field per sublane row.
        # (If b_q were nonzero it would also be scaled by SCALE; it is zero here.)
        slab = jnp.zeros((VEC_ROWS, VEC_LANES), jnp.float32)
        slab = slab.at[ROW_G1, :D].set(1.0)                                # LN1 gamma
        slab = slab.at[ROW_G2, :D].set(1.0)                                # LN2 gamma
        # b_qkv / b_o / LN betas / FFN biases are zero-initialized.
        vec_l.append(slab)

    # Classification head (encoder_last_layer): Linear(D, 2), lane-padded to 128, bf16.
    wh = w(keys[1 + L], (D, 2))
    wh_pad = jnp.zeros((D, HEAD_PAD), jnp.float32).at[:, :2].set(wh)

    return {
        "embedding": embedding,
        "w_qkv": jnp.stack(wqkv_l).astype(jnp.bfloat16),                   # [L, D, 3D]
        "w_o": jnp.stack(wo_l).astype(jnp.bfloat16),                       # [L, D, D]
        "w_f1": jnp.stack(wf1_l).astype(jnp.bfloat16),                     # [L, D, F]
        "w_f2": jnp.stack(wf2_l).astype(jnp.bfloat16),                     # [L, F, D]
        "vec": jnp.stack(vec_l),                                           # [L, 8, 128] f32
        "w_head": wh_pad.astype(jnp.bfloat16),                             # [D, 128] bf16
        "b_head": jnp.zeros((1, HEAD_PAD), jnp.float32),                   # [1, 128] f32
    }


if __name__ == "__main__":
    key = jax.random.PRNGKey(0)
    pkey, tkey = jax.random.split(key)
    params = init_params(pkey)
    # Deterministic "tokenized" input (stands in for self.tok(X)["input_ids"]).
    token_ids = jax.random.randint(tkey, (B, S), 0, V)

    logits = encoder_model_forward(token_ids, params)
    logits = jax.block_until_ready(logits)
    assert logits.shape == (B, 2) and logits.dtype == jnp.float32
    assert bool(jnp.all(jnp.isfinite(logits)))
    print("KERNEL_OK")
</pallas_src>

<mosaic_0001>
module attributes {stable_mosaic.version = 11 : i64} {
  func.func @encoder_layer_kernel(%arg0: i32, %arg1: memref<16x32xf32, #tpu.memory_space<vmem>>, %arg2: memref<1x32x96xbf16, #tpu.memory_space<vmem>>, %arg3: memref<1x32x32xbf16, #tpu.memory_space<vmem>>, %arg4: memref<1x32x64xbf16, #tpu.memory_space<vmem>>, %arg5: memref<1x64x32xbf16, #tpu.memory_space<vmem>>, %arg6: memref<1x8x128xf32, #tpu.memory_space<vmem>>, %arg7: memref<32x128xbf16, #tpu.memory_space<vmem>>, %arg8: memref<1x128xf32, #tpu.memory_space<vmem>>, %arg9: memref<2x128xf32, #tpu.memory_space<vmem>>, %arg10: memref<16x32xf32, #tpu.memory_space<vmem>>) attributes {dimension_semantics = [#tpu.dimension_semantics<arbitrary>], iteration_bounds = array<i64: 2>, scalar_prefetch = 0 : i64, scratch_operands = 1 : i64, tpu.core_type = #tpu.core_type<tc>, window_params = [{pipeline_mode = #tpu.pipeline_mode<synchronous>, transform_indices = @transform_0, window_bounds = array<i64: 16, 32>}, {transform_indices = @transform_1, window_bounds = array<i64: 1, 32, 96>}, {transform_indices = @transform_2, window_bounds = array<i64: 1, 32, 32>}, {transform_indices = @transform_3, window_bounds = array<i64: 1, 32, 64>}, {transform_indices = @transform_4, window_bounds = array<i64: 1, 64, 32>}, {transform_indices = @transform_5, window_bounds = array<i64: 1, 8, 128>}, {pipeline_mode = #tpu.pipeline_mode<synchronous>, transform_indices = @transform_6, window_bounds = array<i64: 32, 128>}, {pipeline_mode = #tpu.pipeline_mode<synchronous>, transform_indices = @transform_7, window_bounds = array<i64: 1, 128>}, {pipeline_mode = #tpu.pipeline_mode<synchronous>, transform_indices = @transform_8, window_bounds = array<i64: 2, 128>}]} {
    %c0_i32 = arith.constant 0 : i32
    %0 = arith.cmpi eq, %arg0, %c0_i32 : i32
    %1 = arith.extui %0 : i1 to i32
    %c0_i32_0 = arith.constant 0 : i32
    %2 = arith.cmpi ne, %1, %c0_i32_0 : i32
    scf.if %2 {
      %c0_63 = arith.constant 0 : index
      %c0_64 = arith.constant 0 : index
      %190 = vector.load %arg1[%c0_63, %c0_64] : memref<16x32xf32, #tpu.memory_space<vmem>>, vector<16x32xf32>
      %c0_65 = arith.constant 0 : index
      %c0_66 = arith.constant 0 : index
      %191 = vector.load %arg10[%c0_65, %c0_66] : memref<16x32xf32, #tpu.memory_space<vmem>>, vector<16x32xf32>
      tpu.vector_store %arg10[%c0_65, %c0_66], %190 {strides = array<i32>} : memref<16x32xf32, #tpu.memory_space<vmem>>, vector<16x32xf32>,
    } else {
    }
    %c0 = arith.constant 0 : index
    %c0_1 = arith.constant 0 : index
    %3 = vector.load %arg10[%c0, %c0_1] : memref<16x32xf32, #tpu.memory_space<vmem>>, vector<16x32xf32>
    %c0_2 = arith.constant 0 : index
    %c0_3 = arith.constant 0 : index
    %c0_4 = arith.constant 0 : index
    %4 = vector.load %arg2[%c0_2, %c0_3, %c0_4] : memref<1x32x96xbf16, #tpu.memory_space<vmem>>, vector<1x32x96xbf16>
    %5 = vector.shape_cast %4 : vector<1x32x96xbf16> to vector<32x96xbf16>
    %c0_5 = arith.constant 0 : index
    %c0_6 = arith.constant 0 : index
    %c0_7 = arith.constant 0 : index
    %6 = vector.load %arg3[%c0_5, %c0_6, %c0_7] : memref<1x32x32xbf16, #tpu.memory_space<vmem>>, vector<1x32x32xbf16>
    %7 = vector.shape_cast %6 : vector<1x32x32xbf16> to vector<32x32xbf16>
    %c0_8 = arith.constant 0 : index
    %c0_9 = arith.constant 0 : index
    %c0_10 = arith.constant 0 : index
    %8 = vector.load %arg4[%c0_8, %c0_9, %c0_10] : memref<1x32x64xbf16, #tpu.memory_space<vmem>>, vector<1x32x64xbf16>
    %9 = vector.shape_cast %8 : vector<1x32x64xbf16> to vector<32x64xbf16>
    %c0_11 = arith.constant 0 : index
    %c0_12 = arith.constant 0 : index
    %c0_13 = arith.constant 0 : index
    %10 = vector.load %arg5[%c0_11, %c0_12, %c0_13] : memref<1x64x32xbf16, #tpu.memory_space<vmem>>, vector<1x64x32xbf16>
    %11 = vector.shape_cast %10 : vector<1x64x32xbf16> to vector<64x32xbf16>
    %c0_14 = arith.constant 0 : index
    %c0_15 = arith.constant 0 : index
    %c0_16 = arith.constant 0 : index
    %12 = vector.load %arg6[%c0_14, %c0_15, %c0_16] : memref<1x8x128xf32, #tpu.memory_space<vmem>>, vector<1x8x128xf32>
    %13 = vector.shape_cast %12 : vector<1x8x128xf32> to vector<8x128xf32>
    %14 = vector.extract_strided_slice %13 {offsets = [0, 0], sizes = [1, 96], strides = [1, 1]} : vector<8x128xf32> to vector<1x96xf32>
    %15 = vector.extract_strided_slice %13 {offsets = [1, 0], sizes = [1, 32], strides = [1, 1]} : vector<8x128xf32> to vector<1x32xf32>
    %16 = vector.extract_strided_slice %13 {offsets = [2, 0], sizes = [1, 32], strides = [1, 1]} : vector<8x128xf32> to vector<1x32xf32>
    %17 = vector.extract_strided_slice %13 {offsets = [3, 0], sizes = [1, 32], strides = [1, 1]} : vector<8x128xf32> to vector<1x32xf32>
    %18 = vector.extract_strided_slice %13 {offsets = [4, 0], sizes = [1, 64], strides = [1, 1]} : vector<8x128xf32> to vector<1x64xf32>
    %19 = vector.extract_strided_slice %13 {offsets = [5, 0], sizes = [1, 32], strides = [1, 1]} : vector<8x128xf32> to vector<1x32xf32>
    %20 = vector.extract_strided_slice %13 {offsets = [6, 0], sizes = [1, 32], strides = [1, 1]} : vector<8x128xf32> to vector<1x32xf32>
    %21 = vector.extract_strided_slice %13 {offsets = [7, 0], sizes = [1, 32], strides = [1, 1]} : vector<8x128xf32> to vector<1x32xf32>
    %22 = arith.truncf %3 : vector<16x32xf32> to vector<16x32xbf16>
    %cst = arith.constant dense<0.000000e+00> : vector<16x96xf32>
    %23 = tpu.matmul %22, %5, %cst {dimension_numbers = #tpu.dot_dimension_numbers<[1], [0], [0], [1], [0, 0, 1, 1], [], []>} : vector<16x32xbf16>, vector<32x96xbf16>, vector<16x96xf32> -> vector<16x96xf32>
    %24 = vector.broadcast %14 : vector<1x96xf32> to vector<16x96xf32>
    %25 = arith.addf %23, %24 : vector<16x96xf32>
    %26 = vector.shape_cast %25 : vector<16x96xf32> to vector<2x8x96xf32>
    %27 = vector.extract_strided_slice %26 {offsets = [0, 0, 0], sizes = [2, 8, 8], strides = [1, 1, 1]} : vector<2x8x96xf32> to vector<2x8x8xf32>
    %28 = vector.extract_strided_slice %26 {offsets = [0, 0, 32], sizes = [2, 8, 8], strides = [1, 1, 1]} : vector<2x8x96xf32> to vector<2x8x8xf32>
    %29 = vector.extract_strided_slice %26 {offsets = [0, 0, 64], sizes = [2, 8, 8], strides = [1, 1, 1]} : vector<2x8x96xf32> to vector<2x8x8xf32>
    "tpu.trace_start"() <{level = 10 : i32, message = "bqd,bkd->bqk"}> : () -> ()
    %cst_17 = arith.constant dense<0.000000e+00> : vector<2x8x8xf32>
    %30 = tpu.matmul %27, %28, %cst_17 {dimension_numbers = #tpu.dot_dimension_numbers<[2], [2], [1], [1], [0, 0, 0, 1, 1, 1], [0], [0]>} : vector<2x8x8xf32>, vector<2x8x8xf32>, vector<2x8x8xf32> -> vector<2x8x8xf32>
    "tpu.trace_stop"() : () -> ()
    %cst_18 = arith.constant dense<0xFF800000> : vector<2x8xf32>
    %31 = vector.multi_reduction <maximumf>, %30, %cst_18 [2] : vector<2x8x8xf32> to vector<2x8xf32>
    %32 = vector.shape_cast %31 : vector<2x8xf32> to vector<2x8x1xf32>
    %33 = vector.broadcast %32 : vector<2x8x1xf32> to vector<2x8x8xf32>
    %34 = arith.subf %30, %33 : vector<2x8x8xf32>
    %35 = math.exp %34 : vector<2x8x8xf32>
    %cst_19 = arith.constant dense<0.000000e+00> : vector<2x8xf32>
    %36 = vector.multi_reduction <add>, %35, %cst_19 [2] : vector<2x8x8xf32> to vector<2x8xf32>
    %37 = vector.shape_cast %36 : vector<2x8xf32> to vector<2x8x1xf32>
    %38 = tpu.reciprocal %37 {approx = true} : vector<2x8x1xf32> -> vector<2x8x1xf32>
    %39 = vector.broadcast %38 : vector<2x8x1xf32> to vector<2x8x8xf32>
    %40 = arith.mulf %35, %39 : vector<2x8x8xf32>
    "tpu.trace_start"() <{level = 10 : i32, message = "bqk,bkd->bqd"}> : () -> ()
    %cst_20 = arith.constant dense<0.000000e+00> : vector<2x8x8xf32>
    %41 = tpu.matmul %40, %29, %cst_20 {dimension_numbers = #tpu.dot_dimension_numbers<[2], [1], [1], [2], [0, 0, 0, 1, 1, 2], [0], [0]>} : vector<2x8x8xf32>, vector<2x8x8xf32>, vector<2x8x8xf32> -> vector<2x8x8xf32>
    "tpu.trace_stop"() : () -> ()
    %42 = vector.extract_strided_slice %26 {offsets = [0, 0, 8], sizes = [2, 8, 8], strides = [1, 1, 1]} : vector<2x8x96xf32> to vector<2x8x8xf32>
    %43 = vector.extract_strided_slice %26 {offsets = [0, 0, 40], sizes = [2, 8, 8], strides = [1, 1, 1]} : vector<2x8x96xf32> to vector<2x8x8xf32>
    %44 = vector.extract_strided_slice %26 {offsets = [0, 0, 72], sizes = [2, 8, 8], strides = [1, 1, 1]} : vector<2x8x96xf32> to vector<2x8x8xf32>
    "tpu.trace_start"() <{level = 10 : i32, message = "bqd,bkd->bqk"}> : () -> ()
    %cst_21 = arith.constant dense<0.000000e+00> : vector<2x8x8xf32>
    %45 = tpu.matmul %42, %43, %cst_21 {dimension_numbers = #tpu.dot_dimension_numbers<[2], [2], [1], [1], [0, 0, 0, 1, 1, 1], [0], [0]>} : vector<2x8x8xf32>, vector<2x8x8xf32>, vector<2x8x8xf32> -> vector<2x8x8xf32>
    "tpu.trace_stop"() : () -> ()
    %cst_22 = arith.constant dense<0xFF800000> : vector<2x8xf32>
    %46 = vector.multi_reduction <maximumf>, %45, %cst_22 [2] : vector<2x8x8xf32> to vector<2x8xf32>
    %47 = vector.shape_cast %46 : vector<2x8xf32> to vector<2x8x1xf32>
    %48 = vector.broadcast %47 : vector<2x8x1xf32> to vector<2x8x8xf32>
    %49 = arith.subf %45, %48 : vector<2x8x8xf32>
    %50 = math.exp %49 : vector<2x8x8xf32>
    %cst_23 = arith.constant dense<0.000000e+00> : vector<2x8xf32>
    %51 = vector.multi_reduction <add>, %50, %cst_23 [2] : vector<2x8x8xf32> to vector<2x8xf32>
    %52 = vector.shape_cast %51 : vector<2x8xf32> to vector<2x8x1xf32>
    %53 = tpu.reciprocal %52 {approx = true} : vector<2x8x1xf32> -> vector<2x8x1xf32>
    %54 = vector.broadcast %53 : vector<2x8x1xf32> to vector<2x8x8xf32>
    %55 = arith.mulf %50, %54 : vector<2x8x8xf32>
    "tpu.trace_start"() <{level = 10 : i32, message = "bqk,bkd->bqd"}> : () -> ()
    %cst_24 = arith.constant dense<0.000000e+00> : vector<2x8x8xf32>
    %56 = tpu.matmul %55, %44, %cst_24 {dimension_numbers = #tpu.dot_dimension_numbers<[2], [1], [1], [2], [0, 0, 0, 1, 1, 2], [0], [0]>} : vector<2x8x8xf32>, vector<2x8x8xf32>, vector<2x8x8xf32> -> vector<2x8x8xf32>
    "tpu.trace_stop"() : () -> ()
    %57 = vector.extract_strided_slice %26 {offsets = [0, 0, 16], sizes = [2, 8, 8], strides = [1, 1, 1]} : vector<2x8x96xf32> to vector<2x8x8xf32>
    %58 = vector.extract_strided_slice %26 {offsets = [0, 0, 48], sizes = [2, 8, 8], strides = [1, 1, 1]} : vector<2x8x96xf32> to vector<2x8x8xf32>
    %59 = vector.extract_strided_slice %26 {offsets = [0, 0, 80], sizes = [2, 8, 8], strides = [1, 1, 1]} : vector<2x8x96xf32> to vector<2x8x8xf32>
    "tpu.trace_start"() <{level = 10 : i32, message = "bqd,bkd->bqk"}> : () -> ()
    %cst_25 = arith.constant dense<0.000000e+00> : vector<2x8x8xf32>
    %60 = tpu.matmul %57, %58, %cst_25 {dimension_numbers = #tpu.dot_dimension_numbers<[2], [2], [1], [1], [0, 0, 0, 1, 1, 1], [0], [0]>} : vector<2x8x8xf32>, vector<2x8x8xf32>, vector<2x8x8xf32> -> vector<2x8x8xf32>
    "tpu.trace_stop"() : () -> ()
    %cst_26 = arith.constant dense<0xFF800000> : vector<2x8xf32>
    %61 = vector.multi_reduction <maximumf>, %60, %cst_26 [2] : vector<2x8x8xf32> to vector<2x8xf32>
    %62 = vector.shape_cast %61 : vector<2x8xf32> to vector<2x8x1xf32>
    %63 = vector.broadcast %62 : vector<2x8x1xf32> to vector<2x8x8xf32>
    %64 = arith.subf %60, %63 : vector<2x8x8xf32>
    %65 = math.exp %64 : vector<2x8x8xf32>
    %cst_27 = arith.constant dense<0.000000e+00> : vector<2x8xf32>
    %66 = vector.multi_reduction <add>, %65, %cst_27 [2] : vector<2x8x8xf32> to vector<2x8xf32>
    %67 = vector.shape_cast %66 : vector<2x8xf32> to vector<2x8x1xf32>
    %68 = tpu.reciprocal %67 {approx = true} : vector<2x8x1xf32> -> vector<2x8x1xf32>
    %69 = vector.broadcast %68 : vector<2x8x1xf32> to vector<2x8x8xf32>
    %70 = arith.mulf %65, %69 : vector<2x8x8xf32>
    "tpu.trace_start"() <{level = 10 : i32, message = "bqk,bkd->bqd"}> : () -> ()
    %cst_28 = arith.constant dense<0.000000e+00> : vector<2x8x8xf32>
    %71 = tpu.matmul %70, %59, %cst_28 {dimension_numbers = #tpu.dot_dimension_numbers<[2], [1], [1], [2], [0, 0, 0, 1, 1, 2], [0], [0]>} : vector<2x8x8xf32>, vector<2x8x8xf32>, vector<2x8x8xf32> -> vector<2x8x8xf32>
    "tpu.trace_stop"() : () -> ()
    %72 = vector.extract_strided_slice %26 {offsets = [0, 0, 24], sizes = [2, 8, 8], strides = [1, 1, 1]} : vector<2x8x96xf32> to vector<2x8x8xf32>
    %73 = vector.extract_strided_slice %26 {offsets = [0, 0, 56], sizes = [2, 8, 8], strides = [1, 1, 1]} : vector<2x8x96xf32> to vector<2x8x8xf32>
    %74 = vector.extract_strided_slice %26 {offsets = [0, 0, 88], sizes = [2, 8, 8], strides = [1, 1, 1]} : vector<2x8x96xf32> to vector<2x8x8xf32>
    "tpu.trace_start"() <{level = 10 : i32, message = "bqd,bkd->bqk"}> : () -> ()
    %cst_29 = arith.constant dense<0.000000e+00> : vector<2x8x8xf32>
    %75 = tpu.matmul %72, %73, %cst_29 {dimension_numbers = #tpu.dot_dimension_numbers<[2], [2], [1], [1], [0, 0, 0, 1, 1, 1], [0], [0]>} : vector<2x8x8xf32>, vector<2x8x8xf32>, vector<2x8x8xf32> -> vector<2x8x8xf32>
    "tpu.trace_stop"() : () -> ()
    %cst_30 = arith.constant dense<0xFF800000> : vector<2x8xf32>
    %76 = vector.multi_reduction <maximumf>, %75, %cst_30 [2] : vector<2x8x8xf32> to vector<2x8xf32>
    %77 = vector.shape_cast %76 : vector<2x8xf32> to vector<2x8x1xf32>
    %78 = vector.broadcast %77 : vector<2x8x1xf32> to vector<2x8x8xf32>
    %79 = arith.subf %75, %78 : vector<2x8x8xf32>
    %80 = math.exp %79 : vector<2x8x8xf32>
    %cst_31 = arith.constant dense<0.000000e+00> : vector<2x8xf32>
    %81 = vector.multi_reduction <add>, %80, %cst_31 [2] : vector<2x8x8xf32> to vector<2x8xf32>
    %82 = vector.shape_cast %81 : vector<2x8xf32> to vector<2x8x1xf32>
    %83 = tpu.reciprocal %82 {approx = true} : vector<2x8x1xf32> -> vector<2x8x1xf32>
    %84 = vector.broadcast %83 : vector<2x8x1xf32> to vector<2x8x8xf32>
    %85 = arith.mulf %80, %84 : vector<2x8x8xf32>
    "tpu.trace_start"() <{level = 10 : i32, message = "bqk,bkd->bqd"}> : () -> ()
    %cst_32 = arith.constant dense<0.000000e+00> : vector<2x8x8xf32>
    %86 = tpu.matmul %85, %74, %cst_32 {dimension_numbers = #tpu.dot_dimension_numbers<[2], [1], [1], [2], [0, 0, 0, 1, 1, 2], [0], [0]>} : vector<2x8x8xf32>, vector<2x8x8xf32>, vector<2x8x8xf32> -> vector<2x8x8xf32>
    "tpu.trace_stop"() : () -> ()
    %87 = tpu.concatenate %41, %56, %71, %86 in 2 : vector<2x8x8xf32>, vector<2x8x8xf32>, vector<2x8x8xf32>, vector<2x8x8xf32> -> vector<2x8x32xf32>
    %88 = vector.shape_cast %87 : vector<2x8x32xf32> to vector<16x32xf32>
    %89 = arith.truncf %88 : vector<16x32xf32> to vector<16x32xbf16>
    %cst_33 = arith.constant dense<0.000000e+00> : vector<16x32xf32>
    %90 = tpu.matmul %89, %7, %cst_33 {dimension_numbers = #tpu.dot_dimension_numbers<[1], [0], [0], [1], [0, 0, 1, 1], [], []>} : vector<16x32xbf16>, vector<32x32xbf16>, vector<16x32xf32> -> vector<16x32xf32>
    %91 = vector.broadcast %15 : vector<1x32xf32> to vector<16x32xf32>
    %92 = arith.addf %90, %91 : vector<16x32xf32>
    %93 = arith.addf %3, %92 : vector<16x32xf32>
    %cst_34 = arith.constant dense<0.000000e+00> : vector<16xf32>
    %94 = vector.multi_reduction <add>, %93, %cst_34 [1] : vector<16x32xf32> to vector<16xf32>
    %95 = vector.shape_cast %94 : vector<16xf32> to vector<16x1xf32>
    %cst_35 = arith.constant 3.200000e+01 : f32
    %96 = vector.broadcast %cst_35 : f32 to vector<16x1xf32>
    %97 = arith.divf %95, %96 : vector<16x1xf32>
    %98 = vector.broadcast %97 : vector<16x1xf32> to vector<16x32xf32>
    %99 = arith.subf %93, %98 : vector<16x32xf32>
    %100 = arith.mulf %99, %99 : vector<16x32xf32>
    %cst_36 = arith.constant dense<0.000000e+00> : vector<16xf32>
    %101 = vector.multi_reduction <add>, %100, %cst_36 [1] : vector<16x32xf32> to vector<16xf32>
    %102 = vector.shape_cast %101 : vector<16xf32> to vector<16x1xf32>
    %cst_37 = arith.constant 3.200000e+01 : f32
    %103 = vector.broadcast %cst_37 : f32 to vector<16x1xf32>
    %104 = arith.divf %102, %103 : vector<16x1xf32>
    %105 = vector.broadcast %97 : vector<16x1xf32> to vector<16x32xf32>
    %106 = arith.subf %93, %105 : vector<16x32xf32>
    %cst_38 = arith.constant 9.99999996E-13 : f32
    %107 = vector.broadcast %cst_38 : f32 to vector<16x1xf32>
    %108 = arith.addf %104, %107 : vector<16x1xf32>
    %109 = math.rsqrt %108 : vector<16x1xf32>
    %110 = vector.broadcast %109 : vector<16x1xf32> to vector<16x32xf32>
    %111 = arith.mulf %106, %110 : vector<16x32xf32>
    %112 = vector.broadcast %16 : vector<1x32xf32> to vector<16x32xf32>
    %113 = arith.mulf %111, %112 : vector<16x32xf32>
    %114 = vector.broadcast %17 : vector<1x32xf32> to vector<16x32xf32>
    %115 = arith.addf %113, %114 : vector<16x32xf32>
    %116 = arith.truncf %115 : vector<16x32xf32> to vector<16x32xbf16>
    %cst_39 = arith.constant dense<0.000000e+00> : vector<16x64xf32>
    %117 = tpu.matmul %116, %9, %cst_39 {dimension_numbers = #tpu.dot_dimension_numbers<[1], [0], [0], [1], [0, 0, 1, 1], [], []>} : vector<16x32xbf16>, vector<32x64xbf16>, vector<16x64xf32> -> vector<16x64xf32>
    %118 = vector.broadcast %18 : vector<1x64xf32> to vector<16x64xf32>
    %119 = arith.addf %117, %118 : vector<16x64xf32>
    %cst_40 = arith.constant 5.000000e-01 : f32
    %120 = vector.broadcast %cst_40 : f32 to vector<16x64xf32>
    %121 = arith.mulf %120, %119 : vector<16x64xf32>
    %cst_41 = arith.constant 0.707106769 : f32
    %122 = vector.broadcast %cst_41 : f32 to vector<16x64xf32>
    %123 = arith.mulf %119, %122 : vector<16x64xf32>
    %124 = math.absf %123 : vector<16x64xf32>
    %cst_42 = arith.constant 0.327591091 : f32
    %125 = vector.broadcast %cst_42 : f32 to vector<16x64xf32>
    %126 = arith.mulf %125, %124 : vector<16x64xf32>
    %cst_43 = arith.constant 1.000000e+00 : f32
    %127 = vector.broadcast %cst_43 : f32 to vector<16x64xf32>
    %128 = arith.addf %127, %126 : vector<16x64xf32>
    %129 = tpu.reciprocal %128 : vector<16x64xf32> -> vector<16x64xf32>
    %cst_44 = arith.constant 1.06140542 : f32
    %130 = vector.broadcast %cst_44 : f32 to vector<16x64xf32>
    %131 = arith.mulf %130, %129 : vector<16x64xf32>
    %cst_45 = arith.constant 1.45315206 : f32
    %132 = vector.broadcast %cst_45 : f32 to vector<16x64xf32>
    %133 = arith.subf %131, %132 : vector<16x64xf32>
    %134 = arith.mulf %133, %129 : vector<16x64xf32>
    %cst_46 = arith.constant 1.42141378 : f32
    %135 = vector.broadcast %cst_46 : f32 to vector<16x64xf32>
    %136 = arith.addf %134, %135 : vector<16x64xf32>
    %137 = arith.mulf %136, %129 : vector<16x64xf32>
    %cst_47 = arith.constant 0.284496725 : f32
    %138 = vector.broadcast %cst_47 : f32 to vector<16x64xf32>
    %139 = arith.subf %137, %138 : vector<16x64xf32>
    %140 = arith.mulf %139, %129 : vector<16x64xf32>
    %cst_48 = arith.constant 0.254829586 : f32
    %141 = vector.broadcast %cst_48 : f32 to vector<16x64xf32>
    %142 = arith.addf %140, %141 : vector<16x64xf32>
    %143 = arith.mulf %142, %129 : vector<16x64xf32>
    %cst_49 = arith.constant 0.000000e+00 : f32
    %144 = vector.broadcast %cst_49 : f32 to vector<16x64xf32>
    %145 = arith.subf %144, %124 : vector<16x64xf32>
    %146 = arith.mulf %145, %124 : vector<16x64xf32>
    %147 = math.exp %146 : vector<16x64xf32>
    %148 = arith.mulf %143, %147 : vector<16x64xf32>
    %cst_50 = arith.constant 1.000000e+00 : f32
    %149 = vector.broadcast %cst_50 : f32 to vector<16x64xf32>
    %150 = arith.subf %149, %148 : vector<16x64xf32>
    %cst_51 = arith.constant 0.000000e+00 : f32
    %151 = vector.broadcast %cst_51 : f32 to vector<16x64xf32>
    %152 = arith.cmpf oge, %123, %151 : vector<16x64xf32>
    %cst_52 = arith.constant 0.000000e+00 : f32
    %153 = vector.broadcast %cst_52 : f32 to vector<16x64xf32>
    %154 = arith.subf %153, %150 : vector<16x64xf32>
    %155 = arith.select %152, %150, %154 : vector<16x64xi1>, vector<16x64xf32>
    %cst_53 = arith.constant 1.000000e+00 : f32
    %156 = vector.broadcast %cst_53 : f32 to vector<16x64xf32>
    %157 = arith.addf %156, %155 : vector<16x64xf32>
    %158 = arith.mulf %121, %157 : vector<16x64xf32>
    %159 = arith.truncf %158 : vector<16x64xf32> to vector<16x64xbf16>
    %cst_54 = arith.constant dense<0.000000e+00> : vector<16x32xf32>
    %160 = tpu.matmul %159, %11, %cst_54 {dimension_numbers = #tpu.dot_dimension_numbers<[1], [0], [0], [1], [0, 0, 1, 1], [], []>} : vector<16x64xbf16>, vector<64x32xbf16>, vector<16x32xf32> -> vector<16x32xf32>
    %161 = vector.broadcast %19 : vector<1x32xf32> to vector<16x32xf32>
    %162 = arith.addf %160, %161 : vector<16x32xf32>
    %163 = arith.addf %115, %162 : vector<16x32xf32>
    %cst_55 = arith.constant dense<0.000000e+00> : vector<16xf32>
    %164 = vector.multi_reduction <add>, %163, %cst_55 [1] : vector<16x32xf32> to vector<16xf32>
    %165 = vector.shape_cast %164 : vector<16xf32> to vector<16x1xf32>
    %cst_56 = arith.constant 3.200000e+01 : f32
    %166 = vector.broadcast %cst_56 : f32 to vector<16x1xf32>
    %167 = arith.divf %165, %166 : vector<16x1xf32>
    %168 = vector.broadcast %167 : vector<16x1xf32> to vector<16x32xf32>
    %169 = arith.subf %163, %168 : vector<16x32xf32>
    %170 = arith.mulf %169, %169 : vector<16x32xf32>
    %cst_57 = arith.constant dense<0.000000e+00> : vector<16xf32>
    %171 = vector.multi_reduction <add>, %170, %cst_57 [1] : vector<16x32xf32> to vector<16xf32>
    %172 = vector.shape_cast %171 : vector<16xf32> to vector<16x1xf32>
    %cst_58 = arith.constant 3.200000e+01 : f32
    %173 = vector.broadcast %cst_58 : f32 to vector<16x1xf32>
    %174 = arith.divf %172, %173 : vector<16x1xf32>
    %175 = vector.broadcast %167 : vector<16x1xf32> to vector<16x32xf32>
    %176 = arith.subf %163, %175 : vector<16x32xf32>
    %cst_59 = arith.constant 9.99999996E-13 : f32
    %177 = vector.broadcast %cst_59 : f32 to vector<16x1xf32>
    %178 = arith.addf %174, %177 : vector<16x1xf32>
    %179 = math.rsqrt %178 : vector<16x1xf32>
    %180 = vector.broadcast %179 : vector<16x1xf32> to vector<16x32xf32>
    %181 = arith.mulf %176, %180 : vector<16x32xf32>
    %182 = vector.broadcast %20 : vector<1x32xf32> to vector<16x32xf32>
    %183 = arith.mulf %181, %182 : vector<16x32xf32>
    %184 = vector.broadcast %21 : vector<1x32xf32> to vector<16x32xf32>
    %185 = arith.addf %183, %184 : vector<16x32xf32>
    %c0_60 = arith.constant 0 : index
    %c0_61 = arith.constant 0 : index
    %186 = vector.load %arg10[%c0_60, %c0_61] : memref<16x32xf32, #tpu.memory_space<vmem>>, vector<16x32xf32>
    tpu.vector_store %arg10[%c0_60, %c0_61], %185 {strides = array<i32>} : memref<16x32xf32, #tpu.memory_space<vmem>>, vector<16x32xf32>,
    %c1_i32 = arith.constant 1 : i32
    %187 = arith.cmpi eq, %arg0, %c1_i32 : i32
    %188 = arith.extui %187 : i1 to i32
    %c0_i32_62 = arith.constant 0 : i32
    %189 = arith.cmpi ne, %188, %c0_i32_62 : i32
    scf.if %189 {
      %190 = vector.shape_cast %185 : vector<16x32xf32> to vector<2x8x32xf32>
      %191 = vector.extract_strided_slice %190 {offsets = [0, 0, 0], sizes = [2, 1, 32], strides = [1, 1, 1]} : vector<2x8x32xf32> to vector<2x1x32xf32>
      %192 = vector.shape_cast %191 : vector<2x1x32xf32> to vector<2x32xf32>
      %193 = arith.truncf %192 : vector<2x32xf32> to vector<2x32xbf16>
      %c0_63 = arith.constant 0 : index
      %c0_64 = arith.constant 0 : index
      %194 = vector.load %arg7[%c0_63, %c0_64] : memref<32x128xbf16, #tpu.memory_space<vmem>>, vector<32x128xbf16>
      %cst_65 = arith.constant dense<0.000000e+00> : vector<2x128xf32>
      %195 = tpu.matmul %193, %194, %cst_65 {dimension_numbers = #tpu.dot_dimension_numbers<[1], [0], [0], [1], [0, 0, 1, 1], [], []>} : vector<2x32xbf16>, vector<32x128xbf16>, vector<2x128xf32> -> vector<2x128xf32>
      %c0_66 = arith.constant 0 : index
      %c0_67 = arith.constant 0 : index
      %196 = vector.load %arg8[%c0_66, %c0_67] : memref<1x128xf32, #tpu.memory_space<vmem>>, vector<1x128xf32>
      %197 = vector.broadcast %196 : vector<1x128xf32> to vector<2x128xf32>
      %198 = arith.addf %195, %197 : vector<2x128xf32>
      %c0_68 = arith.constant 0 : index
      %c0_69 = arith.constant 0 : index
      %199 = vector.load %arg9[%c0_68, %c0_69] : memref<2x128xf32, #tpu.memory_space<vmem>>, vector<2x128xf32>
      tpu.vector_store %arg9[%c0_68, %c0_69], %198 {strides = array<i32>} : memref<2x128xf32, #tpu.memory_space<vmem>>, vector<2x128xf32>,
    } else {
    }
    return
  }
  func.func @transform_0(%arg0: i32) -> (i32, i32) {
    %c0_i32 = arith.constant 0 : i32
    %c0_i32_0 = arith.constant 0 : i32
    %c0_i32_1 = arith.constant 0 : i32
    return %c0_i32, %c0_i32_0 : i32, i32
  }
  func.func @transform_1(%arg0: i32) -> (i32, i32, i32) {
    %c0_i32 = arith.constant 0 : i32
    %c0_i32_0 = arith.constant 0 : i32
    %c0_i32_1 = arith.constant 0 : i32
    return %arg0, %c0_i32, %c0_i32_0 : i32, i32, i32
  }
  func.func @transform_2(%arg0: i32) -> (i32, i32, i32) {
    %c0_i32 = arith.constant 0 : i32
    %c0_i32_0 = arith.constant 0 : i32
    %c0_i32_1 = arith.constant 0 : i32
    return %arg0, %c0_i32, %c0_i32_0 : i32, i32, i32
  }
  func.func @transform_3(%arg0: i32) -> (i32, i32, i32) {
    %c0_i32 = arith.constant 0 : i32
    %c0_i32_0 = arith.constant 0 : i32
    %c0_i32_1 = arith.constant 0 : i32
    return %arg0, %c0_i32, %c0_i32_0 : i32, i32, i32
  }
  func.func @transform_4(%arg0: i32) -> (i32, i32, i32) {
    %c0_i32 = arith.constant 0 : i32
    %c0_i32_0 = arith.constant 0 : i32
    %c0_i32_1 = arith.constant 0 : i32
    return %arg0, %c0_i32, %c0_i32_0 : i32, i32, i32
  }
  func.func @transform_5(%arg0: i32) -> (i32, i32, i32) {
    %c0_i32 = arith.constant 0 : i32
    %c0_i32_0 = arith.constant 0 : i32
    %c0_i32_1 = arith.constant 0 : i32
    return %arg0, %c0_i32, %c0_i32_0 : i32, i32, i32
  }
  func.func @transform_6(%arg0: i32) -> (i32, i32) {
    %c0_i32 = arith.constant 0 : i32
    %c0_i32_0 = arith.constant 0 : i32
    %c0_i32_1 = arith.constant 0 : i32
    return %c0_i32, %c0_i32_0 : i32, i32
  }
  func.func @transform_7(%arg0: i32) -> (i32, i32) {
    %c0_i32 = arith.constant 0 : i32
    %c0_i32_0 = arith.constant 0 : i32
    %c0_i32_1 = arith.constant 0 : i32
    return %c0_i32, %c0_i32_0 : i32, i32
  }
  func.func @transform_8(%arg0: i32) -> (i32, i32) {
    %c0_i32 = arith.constant 0 : i32
    %c0_i32_0 = arith.constant 0 : i32
    %c0_i32_1 = arith.constant 0 : i32
    return %c0_i32, %c0_i32_0 : i32, i32
  }
}

</mosaic_0001>

<bundles_post_ra>
// kernel: encoder_model_forward.1
= control target key start
LH: loop header
LB: loop body
LE: loop exit
PB: predicated region body
PF: predicated region fallthrough
CT: control target
= control target key end

     0   :  { %13 = vsyncpa [#allocation4], 0  ;;  %s2773_s27 = smov 0   ;;  %s3058_s0 = inlined_call_operand.vmem [shape: f32[16,32], index: 0, kind: input, shape index: {}]   ;;  %s3059_s1 = inlined_call_operand.vmem [shape: bf16[2,32,96], index: 1, kind: input, shape index: {}]   ;;  %s3060_s2 = inlined_call_operand.vmem [shape: bf16[2,32,32], index: 2, kind: input, shape index: {}]   ;;  %s3061_s3 = inlined_call_operand.vmem [shape: bf16[2,32,64], index: 3, kind: input, shape index: {}]   ;;  %s3062_s4 = inlined_call_operand.vmem [shape: bf16[2,64,32], index: 4, kind: input, shape index: {}]   ;;  %s3063_s5 = inlined_call_operand.vmem [shape: f32[2,8,128], index: 5, kind: input, shape index: {}]   ;;  %s3064_s6 = inlined_call_operand.vmem [shape: bf16[32,128], index: 6, kind: input, shape index: {}]   ;;  %s3065_s7 = inlined_call_operand.vmem [shape: f32[1,128], index: 7, kind: input, shape index: {}]   ;;  %s3066_s8 = inlined_call_operand.hbm [shape: f32[2,128], index: 8, kind: output, shape index: {}]  }
   0x1 LB: > { %s2779_s28 = sadd.s32 4294967295, %s2707_s27   ;;  %p2324_p0 = scmp.ge.s32.totalorder %s2707_s27, 1  ;;  %s2707_s27 = sphi %s2773_s27, %s19_s27  }
   0x2   : > { %p297_p1 = scmp.lt.s32.totalorder %s2707_s27, 3 }
   0x4   : > { %p298_p2 = pnand %p2324_p0, %p297_p1 }
   0x5   : > { %p345_p3 = scmp.lt.s32.totalorder (!%p298_p2), %s2779_s28, 1  ;;  %p2334_p4 = scmp.ne.s32.totalorder (!%p298_p2), %s2779_s28, 0 }
   0x6   : > { %301 = sbr.rel (%p298_p2) target bundleno = 4395 (0x112b), region = 52 }
   0xd   : > { %s346_s29 = scalar_select %p345_p3, %s2779_s28, 1 }
   0xe   : > { %373 = sbr.rel (%p2334_p4) target bundleno = 21 (0x15), region = 56  ;;  %v374_v0 = vld [vmem:[%s3058_s0] sm:$0xff] (!%p2334_p4)  ;;  %vm376_vm0 = vcmask (!%p2334_p4), 261120   ;;  %v375_v1 = vld [vmem:[%s3058_s0 + $0x8] sm:$0xff] (!%p2334_p4) }
   0xf   : > { %s2386_s30 = sshll.u32 %s346_s29, 4  ;;  %s2389_s9 = sshll.u32 %s346_s29, 5  ;;  %377 = vst.msk [vmem:[#allocation2] sm:$0xff] (!%p2334_p4), %vm376_vm0, %v374_v0  ;;  %378 = vst.msk [vmem:[#allocation2 + $0x8] sm:$0xff] (!%p2334_p4), %vm376_vm0, %v375_v1 }
  0x10   : > { %s349_s12 = scalar_lea.vmem %s3059_s1, %s2386_s30  ;;  %s2791_s15 = scalar_lea.vmem %s3060_s2, %s2386_s30 }
  0x11   : > { %s2796_s18 = scalar_lea.vmem %s3061_s3, %s2386_s30  ;;  %s2801_s21 = scalar_lea.vmem %s3062_s4, %s2389_s9 }
  0x12   : > { %s2333_s22 = sshll.u32 %s346_s29, 3 }
  0x13   : > { %s368_s25 = scalar_lea.vmem %s3063_s5, %s2333_s22 }
  0x15 PF: > { %v2611_v2 = vld [vmem:[%s349_s12] sm:$0xff]   ;;  %v2709_v3 = vmov 0.0   ;;  %v2612_v4 = vld [vmem:[%s349_s12 + $0x8] sm:$0xff]   ;;  %vm2710_vm1 = vmmov 0   ;;  %vm419_vm2 = vcmask 261120   ;;  %v403_v8 = vlaneseq  ;;  %s2711_s29 = smov 96  }
  0x16   : > { %2439 = vmatprep.subr.bf16.mxu0 %v2709_v3  ;;  %2452 = vmatprep.subr.mxu1 %v2709_v3  ;;  %v2817_v5 = vld [vmem:[#allocation2] sm:$0xff]  ;;  %v2819_v6 = vld [vmem:[#allocation2 + $0x8] sm:$0xff]  ;;  %vm467_vm3 = vcmask 64512   ;;  %s2712_s9 = smov 64   ;;  %s2713_s12 = smov 88   ;;  %vm1809_vm4 = vcmask 130048  }
  0x17   : > { %2440 = vmatpush3.bf16.msra.mxu0 %v2611_v2  ;;  %2443 = vmatprep.mubr.msk.bf16.mxu0 %vm2710_vm1, %v2709_v3  ;;  %v402_v7 = vpack.c.bf16 %v2819_v6, %v2817_v5  ;;  %v2830_v9 = vshrl.u32 %v403_v8, 7  ;;  %v2833_v11 = vld [vmem:[%s368_s25] sm:$0xff]  ;;  %s2714_s13 = smov 120   ;;  %s2715_s14 = smov 56   ;;  %vm1812_vm5 = vcmask 195584   ;;  %vm2059_vm8 = vcmask 523264  }
  0x18   : > { %2441 = vmatprep.subr.bf16.mxu0 %v2709_v3  ;;  %2454 = vmatprep.mubr.msk.f32.mxu1 %vm2710_vm1, %v2709_v3  ;;  %s2716_s16 = smov 80   ;;  %s2717_s17 = smov 112  }
  0x19   : > { %v405_v10 = vsub.s32 0, %v2830_v9  ;;  %s2718_s19 = smov 48   ;;  %s2719_s20 = smov 72  }
  0x1a   : > { %s2720_s22 = smov 104   ;;  %s2721_s23 = smov 40  }
  0x1b   : > { %2442 = vmatpush3.bf16.msra.mxu0 %v2612_v4  ;;  %v406_v12 = vrot.slane %v2833_v11, %v405_v10  ;;  %s2722_s24 = smov 8   ;;  %s2723_s25 = smov 16  }
  0x1c   : > { %2447 = vmatprep.subr.mxu0 %v2709_v3  ;;  %s2724_s26 = smov 24   ;;  %p2377_p5 = scmp.ne.s32.totalorder %s2779_s28, 1 }
  0x1d   : > { %vm2726_vm9 = vmmov (!%p2377_p5), 0   ;;  %vm2168_vm10 = vcmask (!%p2377_p5), 1041409  }
  0x1e   : > { %2444 = vmatmul.mubr.msk.bf16.vlgmr.msra.gmra.mrb[0].mxu0 %vm419_vm2, %v402_v7 }
  0x1f   : > { %2449 = vmatprep.mubr.msk.f32.mxu0 %vm2710_vm1, %v2709_v3 }
  0xf1   : > { %v457_v13 = vpop.f32.mrb[0].mxu0 }
  0xf2   : > { %v2836_v14 = vadd.f32 %v457_v13, %v406_v12  ;;  %v2445_v15 = vpop.f32.mrb[1].mxu0 }
  0xf3   : > { %v460_v16 = vpop.f32.mrb[2].mxu0 }
  0xf4   : > { %465 = vrot.lane.b32.xlu0 %v2836_v14, %s2711_s29  ;;  %v2446_v17 = vpop.f32.mrb[3].mxu0  ;;  %v2839_v18 = vadd.f32 %v460_v16, %v406_v12 }
  0xf8   : > { %543 = vrot.lane.b32.xlu0 %v2839_v18, %s2711_s29 }
 0x166   : > { %v466_v19 = vpop.permute.xlu0 %465 }
 0x167   : > { %2448 = vmatpush3.xpose.msk.msra.mxu0 %vm467_vm3, %v466_v19 }
 0x168   : > { %2462 = vmatprep.subr.mxu0 %v2709_v3 }
 0x16a   : > { %2450 = vmatmul.mubr.msk.f32.vlgmr.msra.gmra.mrb[4].mxu0 %vm467_vm3, %v2836_v14  ;;  %v544_v20 = vpop.permute.xlu0 %543 }
 0x16b   : > { %2453 = vmatpush3.xpose.msk.msra.mxu1 %vm467_vm3, %v544_v20  ;;  %2464 = vmatprep.mubr.msk.f32.mxu0 %vm2710_vm1, %v2709_v3 }
 0x16c   : > { %2457 = vmatprep.subr.mxu1 %v2709_v3 }
 0x16e   : > { %2455 = vmatmul.mubr.msk.f32.vlgmr.msra.gmra.mrb[0].mxu1 %vm467_vm3, %v2839_v18 }
 0x16f   : > { %2459 = vmatprep.mubr.msk.f32.mxu1 %vm2710_vm1, %v2709_v3 }
 0x23d   : > { %v538_v21 = vpop.f32.mrb[4].mxu0 }
 0x23e   : > { %v2451_v22 = vpop.f32.mrb[5].mxu0  ;;  %v619_v23 = vsel %vm467_vm3, %v538_v21, -inf }
 0x23f   : > { %620 = vmax.xlane.f32.xlu1 %v619_v23 }
 0x241   : > { %v615_v24 = vpop.f32.mrb[0].mxu1 }
 0x242   : > { %v2456_v25 = vpop.f32.mrb[1].mxu1  ;;  %v622_v26 = vsel %vm467_vm3, %v615_v24, -inf }
 0x243   : > { %623 = vmax.xlane.f32.xlu1 %v622_v26 }
 0x254   : > { %641 = vrot.lane.b32.xlu1 %v2836_v14, %s2712_s9 }
 0x258   : > { %717 = vrot.lane.b32.xlu1 %v2839_v18, %s2712_s9 }
 0x25c   : > { %795 = vrot.lane.b32.xlu1 %v2836_v14, %s2713_s12 }
 0x260   : > { %873 = vrot.lane.b32.xlu1 %v2839_v18, %s2713_s12 }
 0x2cc   : > { %v621_v27 = vpop.xlane.xlu1 %620 }
 0x2cd   : > { %v625_v28 = vsub.f32 %v538_v21, %v621_v27 }
 0x2cf   : > { %v627_v29 = vmul.f32 1.442695, %v625_v28 }
 0x2d0   : > { %v624_v30 = vpop.xlane.xlu1 %623 }
 0x2d1   : > { %2621 = vpow2.f32 %v627_v29  ;;  %v626_v31 = vsub.f32 %v615_v24, %v624_v30 }
 0x2d3   : > { %v629_v32 = vmul.f32 1.442695, %v626_v31 }
 0x2d4   : > { %v642_v33 = vpop.permute.xlu1 %641 }
 0x2d5   : > { %2623 = vpow2.f32 %v629_v32  ;;  %2458 = vmatpush3.msra.mxu1 %v642_v33 }
 0x2d6   : > { %2467 = vmatprep.subr.mxu1 %v2709_v3 }
 0x2d8   : > { %v718_v34 = vpop.permute.xlu1 %717 }
 0x2d9   : > { %2463 = vmatpush3.msra.mxu0 %v718_v34 }
 0x2da   : > { %2472 = vmatprep.subr.mxu0 %v2709_v3 }
 0x2db   : > { %v2622_v35 = vpop.eup %2621 }
 0x2dc   : > { %v631_v36 = vsel %vm467_vm3, %v2622_v35, 0.0  ;;  %v796_v39 = vpop.permute.xlu1 %795 }
 0x2dd   : > { %632 = vadd.xlane.f32.xlu0 %v631_v36 }
 0x2df   : > { %v2624_v37 = vpop.eup %2623 }
 0x2e0   : > { %v634_v38 = vsel %vm467_vm3, %v2624_v37, 0.0  ;;  %v874_v40 = vpop.permute.xlu1 %873 }
 0x2e1   : > { %635 = vadd.xlane.f32.xlu1 %v634_v38 }
 0x2f2   : > { %871 = vrot.lane.b32.xlu1 %v2839_v18, %s2714_s13 }
 0x2f3   : > { %793 = vrot.lane.b32.xlu0 %v2836_v14, %s2714_s13 }
 0x36a   : > { %v633_v41 = vpop.xlane.xlu0 %632 }
 0x36b   : > { %2625 = vrcp.f32 %v633_v41 }
 0x36e   : > { %v636_v42 = vpop.xlane.xlu1 %635  ;;  %v794_v47 = vpop.permute.xlu0 %793 }
 0x36f   : > { %2627 = vrcp.f32 %v636_v42 }
 0x372   : > { %v872_v48 = vpop.permute.xlu1 %871 }
 0x375   : > { %v2626_v43 = vpop.eup %2625 }
 0x376   : > { %v639_v44 = vmul.f32 %v2626_v43, %v2622_v35 }
 0x378   : > { %2460 = vmatmul.mubr.msk.f32.vlgmr.msra.gmra.mrb[2].mxu1 %vm467_vm3, %v639_v44 }
 0x379   : > { %v2628_v45 = vpop.eup %2627  ;;  %2468 = vmatpush3.xpose.msk.msra.mxu1 %vm467_vm3, %v796_v39  ;;  %2469 = vmatprep.mubr.msk.f32.mxu1 %vm2710_vm1, %v2709_v3 }
 0x37a   : > { %v640_v46 = vmul.f32 %v2628_v45, %v2624_v37  ;;  %2477 = vmatprep.subr.mxu1 %v2709_v3 }
 0x37c   : > { %2465 = vmatmul.mubr.msk.f32.vlgmr.msra.gmra.mrb[6].mxu0 %vm467_vm3, %v640_v46  ;;  %2470 = vmatmul.mubr.msk.f32.vlgmr.msra.gmra.mrb[4].mxu1 %vm467_vm3, %v794_v47 }
 0x37d   : > { %2473 = vmatpush3.xpose.msk.msra.mxu0 %vm467_vm3, %v874_v40  ;;  %2474 = vmatprep.mubr.msk.f32.mxu0 %vm2710_vm1, %v2709_v3 }
 0x37e   : > { %2482 = vmatprep.subr.mxu0 %v2709_v3  ;;  %2479 = vmatprep.mubr.msk.f32.mxu1 %vm2710_vm1, %v2709_v3 }
 0x380   : > { %2475 = vmatmul.mubr.msk.f32.vlgmr.msra.gmra.mrb[8].mxu0 %vm467_vm3, %v872_v48 }
 0x381   : > { %2484 = vmatprep.mubr.msk.f32.mxu0 %vm2710_vm1, %v2709_v3 }
 0x44b   : > { %v2882_v49 = vpop.f32.mrb[2].mxu1 }
 0x44c   : > { %v2461_v50 = vpop.f32.mrb[3].mxu1 }
 0x44f   : > { %v2884_v51 = vpop.f32.mrb[6].mxu0  ;;  %v867_v52 = vpop.f32.mrb[4].mxu1 }
 0x450   : > { %v2466_v53 = vpop.f32.mrb[7].mxu0  ;;  %v2471_v54 = vpop.f32.mrb[5].mxu1  ;;  %v949_v55 = vsel %vm467_vm3, %v867_v52, -inf }
 0x451   : > { %950 = vmax.xlane.f32.xlu1 %v949_v55 }
 0x453   : > { %v945_v56 = vpop.f32.mrb[8].mxu0 }
 0x454   : > { %v2476_v57 = vpop.f32.mrb[9].mxu0  ;;  %v952_v58 = vsel %vm467_vm3, %v945_v56, -inf }
 0x455   : > { %953 = vmax.xlane.f32.xlu0 %v952_v58 }
 0x462   : > { %971 = vrot.lane.b32.xlu1 %v2836_v14, %s2715_s14 }
 0x466   : > { %1125 = vrot.lane.b32.xlu1 %v2836_v14, %s2716_s16 }
 0x46a   : > { %1203 = vrot.lane.b32.xlu1 %v2839_v18, %s2716_s16 }
 0x46b   : > { %1047 = vrot.lane.b32.xlu0 %v2839_v18, %s2715_s14 }
 0x46f   : > { %1123 = vrot.lane.b32.xlu0 %v2836_v14, %s2717_s17 }
 0x4de   : > { %v951_v59 = vpop.xlane.xlu1 %950 }
 0x4df   : > { %v955_v60 = vsub.f32 %v867_v52, %v951_v59 }
 0x4e1   : > { %v957_v61 = vmul.f32 1.442695, %v955_v60 }
 0x4e2   : > { %v972_v62 = vpop.permute.xlu1 %971  ;;  %v954_v63 = vpop.xlane.xlu0 %953 }
 0x4e3   : > { %2629 = vpow2.f32 %v957_v61  ;;  %v956_v0 = vsub.f32 %v945_v56, %v954_v63  ;;  %2478 = vmatpush3.msra.mxu1 %v972_v62 }
 0x4e4   : > { %2487 = vmatprep.subr.mxu1 %v2709_v3 }
 0x4e5   : > { %v959_v1 = vmul.f32 1.442695, %v956_v0 }
 0x4e6   : > { %v1048_v2 = vpop.permute.xlu0 %1047  ;;  %v1126_v12 = vpop.permute.xlu1 %1125 }
 0x4e7   : > { %2631 = vpow2.f32 %v959_v1  ;;  %2483 = vmatpush3.msra.mxu0 %v1048_v2 }
 0x4e8   : > { %2492 = vmatprep.subr.mxu0 %v2709_v3 }
 0x4ea   : > { %v1204_v13 = vpop.permute.xlu1 %1203  ;;  %v1124_v22 = vpop.permute.xlu0 %1123 }
 0x4ed   : > { %v2630_v4 = vpop.eup %2629 }
 0x4ee   : > { %v961_v7 = vsel %vm467_vm3, %v2630_v4, 0.0 }
 0x4ef   : > { %962 = vadd.xlane.f32.xlu1 %v961_v7 }
 0x4f1   : > { %v2632_v8 = vpop.eup %2631 }
 0x4f2   : > { %v964_v10 = vsel %vm467_vm3, %v2632_v8, 0.0 }
 0x4f3   : > { %965 = vadd.xlane.f32.xlu1 %v964_v10 }
 0x504   : > { %1201 = vrot.lane.b32.xlu1 %v2839_v18, %s2717_s17 }
 0x57c   : > { %v963_v15 = vpop.xlane.xlu1 %962 }
 0x57d   : > { %2633 = vrcp.f32 %v963_v15 }
 0x580   : > { %v966_v16 = vpop.xlane.xlu1 %965 }
 0x581   : > { %2635 = vrcp.f32 %v966_v16 }
 0x584   : > { %v1202_v23 = vpop.permute.xlu1 %1201 }
 0x587   : > { %v2634_v17 = vpop.eup %2633 }
 0x588   : > { %v969_v19 = vmul.f32 %v2634_v17, %v2630_v4 }
 0x58a   : > { %2480 = vmatmul.mubr.msk.f32.vlgmr.msra.gmra.mrb[6].mxu1 %vm467_vm3, %v969_v19 }
 0x58b   : > { %v2636_v20 = vpop.eup %2635  ;;  %2488 = vmatpush3.xpose.msk.msra.mxu1 %vm467_vm3, %v1126_v12  ;;  %2489 = vmatprep.mubr.msk.f32.mxu1 %vm2710_vm1, %v2709_v3 }
 0x58c   : > { %v970_v21 = vmul.f32 %v2636_v20, %v2632_v8  ;;  %2497 = vmatprep.subr.mxu1 %v2709_v3 }
 0x58e   : > { %2485 = vmatmul.mubr.msk.f32.vlgmr.msra.gmra.mrb[10].mxu0 %vm467_vm3, %v970_v21  ;;  %2490 = vmatmul.mubr.msk.f32.vlgmr.msra.gmra.mrb[8].mxu1 %vm467_vm3, %v1124_v22 }
 0x58f   : > { %2493 = vmatpush3.xpose.msk.msra.mxu0 %vm467_vm3, %v1204_v13  ;;  %2494 = vmatprep.mubr.msk.f32.mxu0 %vm2710_vm1, %v2709_v3 }
 0x590   : > { %2502 = vmatprep.subr.mxu0 %v2709_v3  ;;  %2499 = vmatprep.mubr.msk.f32.mxu1 %vm2710_vm1, %v2709_v3 }
 0x592   : > { %2495 = vmatmul.mubr.msk.f32.vlgmr.msra.gmra.mrb[12].mxu0 %vm467_vm3, %v1202_v23 }
 0x593   : > { %2504 = vmatprep.mubr.msk.f32.mxu0 %vm2710_vm1, %v2709_v3 }
 0x65d   : > { %v2914_v24 = vpop.f32.mrb[6].mxu1 }
 0x65e   : > { %v2481_v25 = vpop.f32.mrb[7].mxu1 }
 0x661   : > { %v2916_v26 = vpop.f32.mrb[10].mxu0  ;;  %v1197_v27 = vpop.f32.mrb[8].mxu1 }
 0x662   : > { %v2596_v28 = vpack.i.bf16 %v2916_v26, %v2914_v24  ;;  %v2486_v29 = vpop.f32.mrb[11].mxu0  ;;  %v2491_v30 = vpop.f32.mrb[9].mxu1  ;;  %v1279_v31 = vsel %vm467_vm3, %v1197_v27, -inf }
 0x663   : > { %1280 = vmax.xlane.f32.xlu0 %v1279_v31  ;;  %v2614_v30 = vld [vmem:[%s2791_s15 + $0x8] sm:$0xff]  }
 0x665   : > { %v1275_v32 = vpop.f32.mrb[12].mxu0 }
 0x666   : > { %v2496_v33 = vpop.f32.mrb[13].mxu0  ;;  %v1282_v34 = vsel %vm467_vm3, %v1275_v32, -inf }
 0x667   : > { %1283 = vmax.xlane.f32.xlu1 %v1282_v34 }
 0x678   : > { %1301 = vrot.lane.b32.xlu1 %v2836_v14, %s2718_s19 }
 0x679   : > { %1377 = vrot.lane.b32.xlu0 %v2839_v18, %s2718_s19 }
 0x67c   : > { %1455 = vrot.lane.b32.xlu1 %v2836_v14, %s2719_s20 }
 0x680   : > { %1533 = vrot.lane.b32.xlu1 %v2839_v18, %s2719_s20 }
 0x684   : > { %1531 = vrot.lane.b32.xlu1 %v2839_v18, %s2720_s22 }
 0x6f0   : > { %v1281_v35 = vpop.xlane.xlu0 %1280 }
 0x6f1   : > { %v1285_v36 = vsub.f32 %v1197_v27, %v1281_v35 }
 0x6f3   : > { %v1287_v37 = vmul.f32 1.442695, %v1285_v36 }
 0x6f4   : > { %v1378_v38 = vpop.permute.xlu0 %1377  ;;  %v1284_v39 = vpop.xlane.xlu1 %1283 }
 0x6f5   : > { %2637 = vpow2.f32 %v1287_v37  ;;  %v1286_v40 = vsub.f32 %v1275_v32, %v1284_v39  ;;  %2503 = vmatpush3.msra.mxu0 %v1378_v38 }
 0x6f6   : > { %2512 = vmatprep.subr.mxu0 %v2709_v3 }
 0x6f7   : > { %v1289_v41 = vmul.f32 1.442695, %v1286_v40 }
 0x6f8   : > { %v1302_v42 = vpop.permute.xlu1 %1301 }
 0x6f9   : > { %2639 = vpow2.f32 %v1289_v41  ;;  %2498 = vmatpush3.msra.mxu1 %v1302_v42 }
 0x6fa   : > { %2507 = vmatprep.subr.mxu1 %v2709_v3 }
 0x6fc   : > { %v1456_v50 = vpop.permute.xlu1 %1455 }
 0x6ff   : > { %v2638_v43 = vpop.eup %2637 }
 0x700   : > { %v1291_v44 = vsel %vm467_vm3, %v2638_v43, 0.0  ;;  %v1534_v55 = vpop.permute.xlu1 %1533 }
 0x701   : > { %1292 = vadd.xlane.f32.xlu0 %v1291_v44 }
 0x703   : > { %v2640_v45 = vpop.eup %2639 }
 0x704   : > { %v1294_v46 = vsel %vm467_vm3, %v2640_v45, 0.0  ;;  %v1532_v58 = vpop.permute.xlu1 %1531 }
 0x705   : > { %1295 = vadd.xlane.f32.xlu0 %v1294_v46 }
 0x71b   : > { %1453 = vrot.lane.b32.xlu0 %v2836_v14, %s2720_s22 }
 0x78e   : > { %v1293_v47 = vpop.xlane.xlu0 %1292 }
 0x78f   : > { %2641 = vrcp.f32 %v1293_v47 }
 0x792   : > { %v1296_v48 = vpop.xlane.xlu0 %1295 }
 0x793   : > { %2643 = vrcp.f32 %v1296_v48 }
 0x796   : > { %v1454_v57 = vpop.permute.xlu0 %1453 }
 0x799   : > { %v2642_v52 = vpop.eup %2641 }
 0x79a   : > { %v1299_v53 = vmul.f32 %v2642_v52, %v2638_v43 }
 0x79c   : > { %2500 = vmatmul.mubr.msk.f32.vlgmr.msra.gmra.mrb[10].mxu1 %vm467_vm3, %v1299_v53 }
 0x79d   : > { %v2644_v54 = vpop.eup %2643  ;;  %2508 = vmatpush3.xpose.msk.msra.mxu1 %vm467_vm3, %v1456_v50  ;;  %2509 = vmatprep.mubr.msk.f32.mxu1 %vm2710_vm1, %v2709_v3 }
 0x79e   : > { %v1300_v56 = vmul.f32 %v2644_v54, %v2640_v45  ;;  %2517 = vmatprep.subr.mxu1 %v2709_v3  ;;  %v1818_v54 = vsub.s32 1, %v2830_v9 }
 0x7a0   : > { %2505 = vmatmul.mubr.msk.f32.vlgmr.msra.gmra.mrb[14].mxu0 %vm467_vm3, %v1300_v56  ;;  %2510 = vmatmul.mubr.msk.f32.vlgmr.msra.gmra.mrb[12].mxu1 %vm467_vm3, %v1454_v57 }
 0x7a1   : > { %2513 = vmatpush3.xpose.msk.msra.mxu0 %vm467_vm3, %v1534_v55  ;;  %2514 = vmatprep.mubr.msk.f32.mxu0 %vm2710_vm1, %v2709_v3  ;;  %v1819_v55 = vrot.slane %v2833_v11, %v1818_v54 }
 0x7a2   : > { %2522 = vmatprep.subr.mxu0 %v2709_v3  ;;  %2519 = vmatprep.mubr.msk.f32.mxu1 %vm2710_vm1, %v2709_v3 }
 0x7a4   : > { %2515 = vmatmul.mubr.msk.f32.vlgmr.msra.gmra.mrb[16].mxu0 %vm467_vm3, %v1532_v58 }
 0x7a5   : > { %2524 = vmatprep.mubr.msk.f32.mxu0 %vm2710_vm1, %v2709_v3 }
 0x86f   : > { %v1373_v59 = vpop.f32.mrb[10].mxu1 }
 0x870   : > { %v2501_v60 = vpop.f32.mrb[11].mxu1 }
 0x873   : > { %v1449_v61 = vpop.f32.mrb[14].mxu0  ;;  %v1527_v62 = vpop.f32.mrb[12].mxu1 }
 0x874   : > { %v2601_v63 = vpack.i.bf16 %v1449_v61, %v1373_v59  ;;  %v2506_v0 = vpop.f32.mrb[15].mxu0  ;;  %v2511_v1 = vpop.f32.mrb[13].mxu1  ;;  %v1609_v2 = vsel %vm467_vm3, %v1527_v62, -inf }
 0x875   : > { %1610 = vmax.xlane.f32.xlu0 %v1609_v2 }
 0x877   : > { %v1605_v4 = vpop.f32.mrb[16].mxu0 }
 0x878   : > { %v2516_v7 = vpop.f32.mrb[17].mxu0  ;;  %v1612_v8 = vsel %vm467_vm3, %v1605_v4, -inf }
 0x879   : > { %1613 = vmax.xlane.f32.xlu1 %v1612_v8 }
 0x88a   : > { %1631 = vrot.lane.b32.xlu1 %v2836_v14, %s2721_s23 }
 0x88e   : > { %2597 = vrot.lane.b32.xlu1 %v2596_v28, %s2722_s24 }
 0x892   : > { %2602 = vrot.lane.b32.xlu1 %v2601_v63, %s2723_s25 }
 0x902   : > { %v1611_v10 = vpop.xlane.xlu0 %1610 }
 0x903   : > { %v1615_v12 = vsub.f32 %v1527_v62, %v1611_v10 }
 0x905   : > { %v1617_v13 = vmul.f32 1.442695, %v1615_v12 }
 0x906   : > { %v1614_v15 = vpop.xlane.xlu1 %1613 }
 0x907   : > { %2645 = vpow2.f32 %v1617_v13  ;;  %v1616_v16 = vsub.f32 %v1605_v4, %v1614_v15  ;;  %v2616_v15 = vld [vmem:[%s2796_s18 + $0x8] sm:$0xff]  }
 0x909   : > { %v1619_v17 = vmul.f32 1.442695, %v1616_v16 }
 0x90a   : > { %v1632_v19 = vpop.permute.xlu1 %1631 }
 0x90b   : > { %2647 = vpow2.f32 %v1619_v17  ;;  %2518 = vmatpush3.msra.mxu1 %v1632_v19 }
 0x90c   : > { %2527 = vmatprep.subr.bf16.mxu1 %v2709_v3 }
 0x90e   : > { %v2598_v36 = vpop.permute.xlu1 %2597 }
 0x90f   : > { %v2600_v38 = vunpack.i.h.bf16 %v2598_v36  ;;  %v2599_v39 = vunpack.i.l.bf16 %v2598_v36  ;;  %v2619_v36 = vld [vmem:[%s2801_s21 + $0x10] sm:$0xff]  }
 0x911   : > { %v2646_v14 = vpop.eup %2645  ;;  %v1808_v43 = vsel %vm467_vm3, %v2884_v51, %v2600_v38  ;;  %v1807_v44 = vsel %vm467_vm3, %v2882_v49, %v2599_v39  ;;  %v1920_v38 = vsub.s32 4, %v2830_v9 }
 0x912   : > { %v1621_v20 = vsel %vm467_vm3, %v2646_v14, 0.0  ;;  %v2603_v37 = vpop.permute.xlu1 %2602 }
 0x913   : > { %1622 = vadd.xlane.f32.xlu0 %v1621_v20  ;;  %v2605_v40 = vunpack.i.h.bf16 %v2603_v37  ;;  %v2604_v41 = vunpack.i.l.bf16 %v2603_v37  ;;  %v2620_v37 = vld [vmem:[%s2801_s21 + $0x18] sm:$0xff]   ;;  %v1921_v39 = vrot.slane %v2833_v11, %v1920_v38 }
 0x915   : > { %v2648_v21 = vpop.eup %2647  ;;  %v1810_v47 = vsel %vm1809_vm4, %v1807_v44, %v2604_v41  ;;  %v1811_v48 = vsel %vm1809_vm4, %v1808_v43, %v2605_v40 }
 0x916   : > { %v1624_v22 = vsel %vm467_vm3, %v2648_v21, 0.0 }
 0x917   : > { %1625 = vadd.xlane.f32.xlu0 %v1624_v22  ;;  %v1907_v22 = vsub.s32 2, %v2830_v9 }
 0x92d   : > { %1707 = vrot.lane.b32.xlu0 %v2839_v18, %s2721_s23  ;;  %v2613_v18 = vld [vmem:[%s2791_s15] sm:$0xff]  }
 0x9a0   : > { %v1623_v23 = vpop.xlane.xlu0 %1622 }
 0x9a1   : > { %2649 = vrcp.f32 %v1623_v23  ;;  %v1908_v23 = vrot.slane %v2833_v11, %v1907_v22 }
 0x9a4   : > { %v1626_v24 = vpop.xlane.xlu0 %1625 }
 0x9a5   : > { %2651 = vrcp.f32 %v1626_v24  ;;  %v1913_v24 = vsub.s32 3, %v2830_v9 }
 0x9a8   : > { %v1708_v25 = vpop.permute.xlu0 %1707 }
 0x9a9   : > { %2523 = vmatpush3.msra.mxu0 %v1708_v25 }
 0x9aa   : > { %2535 = vmatprep.subr.bf16.mxu0 %v2709_v3 }
 0x9ab   : > { %v2650_v26 = vpop.eup %2649 }
 0x9ac   : > { %v1629_v27 = vmul.f32 %v2650_v26, %v2646_v14 }
 0x9ae   : > { %2520 = vmatmul.mubr.msk.f32.vlgmr.msra.gmra.mrb[14].mxu1 %vm467_vm3, %v1629_v27 }
 0x9af   : > { %v2652_v28 = vpop.eup %2651  ;;  %2531 = vmatprep.mubr.msk.bf16.mxu1 %vm2710_vm1, %v2709_v3  ;;  %2528 = vmatpush3.bf16.msra.mxu1 %v2613_v18  ;;  %v1914_v18 = vrot.slane %v2833_v11, %v1913_v24 }
 0x9b0   : > { %v1630_v29 = vmul.f32 %v2652_v28, %v2648_v21  ;;  %2529 = vmatprep.subr.bf16.mxu1 %v2709_v3 }
 0x9b2   : > { %2525 = vmatmul.mubr.msk.f32.vlgmr.msra.gmra.mrb[18].mxu0 %vm467_vm3, %v1630_v29 }
 0x9b3   : > { %2539 = vmatprep.mubr.msk.bf16.mxu0 %vm2710_vm1, %v2709_v3  ;;  %2530 = vmatpush3.bf16.msra.mxu1 %v2614_v30 }
 0x9b4   : > { %2543 = vmatprep.subr.bf16.mxu1 %v2709_v3 }
 0xa81   : > { %v1703_v31 = vpop.f32.mrb[14].mxu1 }
 0xa82   : > { %v2521_v32 = vpop.f32.mrb[15].mxu1 }
 0xa85   : > { %v1779_v33 = vpop.f32.mrb[18].mxu0 }
 0xa86   : > { %v2606_v34 = vpack.i.bf16 %v1779_v33, %v1703_v31  ;;  %v2526_v35 = vpop.f32.mrb[19].mxu0 }
 0xa87   : > { %v2618_v35 = vld [vmem:[%s2801_s21 + $0x8] sm:$0xff]  }
 0xa88   : > { %2607 = vrot.lane.b32.xlu0 %v2606_v34, %s2724_s26  ;;  %v2617_v34 = vld [vmem:[%s2801_s21] sm:$0xff]  }
 0xafa   : > { %v2608_v42 = vpop.permute.xlu0 %2607 }
 0xafb   : > { %v2610_v45 = vunpack.i.h.bf16 %v2608_v42  ;;  %v2609_v46 = vunpack.i.l.bf16 %v2608_v42 }
 0xafd   : > { %v1814_v50 = vsel %vm1812_vm5, %v1811_v48, %v2610_v45  ;;  %v1813_v52 = vsel %vm1812_vm5, %v1810_v47, %v2609_v46 }
 0xafe   : > { %v1815_v53 = vpack.c.bf16 %v1814_v50, %v1813_v52 }
 0xb00   : > { %2532 = vmatmul.mubr.msk.bf16.vlgmr.msra.gmra.mrb[16].mxu1 %vm419_vm2, %v1815_v53 }
 0xb01   : > { %2551 = vmatprep.mubr.msk.bf16.mxu1 %vm2710_vm1, %v2709_v3  ;;  %2544 = vmatpush3.bf16.msra.mxu1 %v2617_v34 }
 0xb02   : > { %2545 = vmatprep.subr.bf16.mxu1 %v2709_v3 }
 0xb05   : > { %2546 = vmatpush3.bf16.msra.mxu1 %v2618_v35 }
 0xb06   : > { %2547 = vmatprep.subr.bf16.mxu1 %v2709_v3 }
 0xb09   : > { %2548 = vmatpush3.bf16.msra.mxu1 %v2619_v36 }
 0xb0a   : > { %2549 = vmatprep.subr.bf16.mxu1 %v2709_v3 }
 0xb0d   : > { %2550 = vmatpush3.bf16.msra.mxu1 %v2620_v37  ;;  %v2033_v37 = vsub.s32 5, %v2830_v9 }
 0xb0f   : > { %v2034_v38 = vrot.slane %v2833_v11, %v2033_v37 }
 0xbd3   : > { %v1869_v51 = vpop.f32.mrb[16].mxu1 }
 0xbd4   : > { %v1870_v56 = vadd.f32 %v1869_v51, %v1819_v55  ;;  %v2533_v57 = vpop.f32.mrb[17].mxu1 }
 0xbd5   : > { %v1872_v49 = vpop.f32.mrb[18].mxu1 }
 0xbd6   : > { %v1873_v58 = vadd.f32 %v1872_v49, %v1819_v55  ;;  %v2534_v59 = vpop.f32.mrb[19].mxu1  ;;  %v1876_v60 = vadd.f32 %v1870_v56, %v2817_v5 }
 0xbd8   : > { %v1878_v61 = vsel %vm419_vm2, %v1876_v60, 0.0  ;;  %v1877_v62 = vadd.f32 %v1873_v58, %v2819_v6  ;;  %v2615_v6 = vld [vmem:[%s2796_s18] sm:$0xff]  }
 0xbd9   : > { %1879 = vadd.xlane.f32.xlu1 %v1878_v61  ;;  %2536 = vmatpush3.bf16.msra.mxu0 %v2615_v6 }
 0xbda   : > { %v1881_v63 = vsel %vm419_vm2, %v1877_v62, 0.0  ;;  %2537 = vmatprep.subr.bf16.mxu0 %v2709_v3 }
 0xbdb   : > { %1882 = vadd.xlane.f32.xlu0 %v1881_v63 }
 0xbdd   : > { %2538 = vmatpush3.bf16.msra.mxu0 %v2616_v15 }
 0xc66   : > { %v1880_v0 = vpop.xlane.xlu1 %1879 }
 0xc67   : > { %v1885_v1 = vmul.f32 0.03125, %v1880_v0 }
 0xc68   : > { %v1883_v2 = vpop.xlane.xlu0 %1882 }
 0xc69   : > { %v1887_v4 = vsub.f32 %v1876_v60, %v1885_v1  ;;  %v1886_v7 = vmul.f32 0.03125, %v1883_v2 }
 0xc6b   : > { %v1888_v8 = vsub.f32 %v1877_v62, %v1886_v7  ;;  %v1889_v10 = vmul.f32 %v1887_v4, %v1887_v4 }
 0xc6d   : > { %v1891_v12 = vsel %vm419_vm2, %v1889_v10, 0.0  ;;  %v1890_v5 = vmul.f32 %v1888_v8, %v1888_v8 }
 0xc6e   : > { %1892 = vadd.xlane.f32.xlu0 %v1891_v12 }
 0xc6f   : > { %v1894_v13 = vsel %vm419_vm2, %v1890_v5, 0.0 }
 0xc70   : > { %1895 = vadd.xlane.f32.xlu1 %v1894_v13 }
 0xcfb   : > { %v1893_v16 = vpop.xlane.xlu0 %1892 }
 0xcfc   : > { %v1897_v17 = vmul.f32 0.03125, %v1893_v16 }
 0xcfd   : > { %v1896_v19 = vpop.xlane.xlu1 %1895 }
 0xcfe   : > { %v1899_v14 = vadd.f32 1e-12, %v1897_v17  ;;  %v1898_v20 = vmul.f32 0.03125, %v1896_v19 }
 0xd00   : > { %2653 = vrsqrt.f32 %v1899_v14  ;;  %v1900_v21 = vadd.f32 1e-12, %v1898_v20 }
 0xd02   : > { %2655 = vrsqrt.f32 %v1900_v21 }
 0xd0a   : > { %v2654_v25 = vpop.eup %2653 }
 0xd0b   : > { %v1903_v26 = vmul.f32 %v2654_v25, %v1887_v4 }
 0xd0c   : > { %v2656_v27 = vpop.eup %2655 }
 0xd0d   : > { %v1909_v28 = vmul.f32 %v1908_v23, %v1903_v26  ;;  %v1904_v29 = vmul.f32 %v2656_v27, %v1888_v8 }
 0xd0f   : > { %v1910_v30 = vmul.f32 %v1908_v23, %v1904_v29  ;;  %v2991_v31 = vadd.f32 %v1914_v18, %v1909_v28 }
 0xd11   : > { %v2993_v32 = vadd.f32 %v1914_v18, %v1910_v30 }
 0xd13   : > { %v1917_v33 = vpack.c.bf16 %v2993_v32, %v2991_v31 }
 0xd15   : > { %2540 = vmatmul.mubr.msk.bf16.vlgmr.msra.gmra.mrb[20].mxu0 %vm419_vm2, %v1917_v33 }
 0xde8   : > { %v1971_v40 = vpop.f32.mrb[20].mxu0 }
 0xde9   : > { %v1972_v41 = vadd.f32 %v1971_v40, %v1921_v39  ;;  %v2541_v42 = vpop.f32.mrb[21].mxu0 }
 0xdea   : > { %v1974_v43 = vpop.f32.mrb[22].mxu0 }
 0xdeb   : > { %v1980_v44 = vmul.f32 0.70710677, %v1972_v41  ;;  %v1975_v45 = vadd.f32 %v1974_v43, %v1921_v39  ;;  %v2542_v46 = vpop.f32.mrb[23].mxu0  ;;  %v1978_v18 = vmul.f32 0.5, %v1972_v41 }
 0xded   : > { %v1982_v47 = vand.u32 2147483647, %v1980_v44  ;;  %v1981_v48 = vmul.f32 0.70710677, %v1975_v45  ;;  %vm2020_vm6 = vcmp.ge.f32.partialorder %v1980_v44, 0.0  ;;  %v1979_v30 = vmul.f32 0.5, %v1975_v45 }
 0xdef   : > { %v1984_v50 = vmul.f32 0.3275911, %v1982_v47  ;;  %v1983_v52 = vand.u32 2147483647, %v1981_v48  ;;  %v2008_v55 = vsub.f32 0.0, %v1982_v47  ;;  %vm2021_vm7 = vcmp.ge.f32.partialorder %v1981_v48, 0.0 }
 0xdf1   : > { %v1986_v53 = vadd.f32 1.0, %v1984_v50  ;;  %v1985_v54 = vmul.f32 0.3275911, %v1983_v52  ;;  %v2009_v51 = vsub.f32 0.0, %v1983_v52  ;;  %v2010_v57 = vmul.f32 %v2008_v55, %v1982_v47 }
 0xdf3   : > { %2657 = vrcp.f32 %v1986_v53  ;;  %v1987_v3 = vadd.f32 1.0, %v1985_v54  ;;  %v2011_v60 = vmul.f32 %v2009_v51, %v1983_v52  ;;  %v2012_v61 = vmul.f32 1.442695, %v2010_v57 }
 0xdf5   : > { %2659 = vrcp.f32 %v1987_v3  ;;  %v2014_v2 = vmul.f32 1.442695, %v2011_v60 }
 0xdf6   : > { %2661 = vpow2.f32 %v2012_v61 }
 0xdf7   : > { %2663 = vpow2.f32 %v2014_v2 }
 0xdfd   : > { %v2658_v56 = vpop.eup %2657 }
 0xdfe   : > { %v1990_v49 = vmul.f32 1.0614054, %v2658_v56 }
 0xdff   : > { %v2660_v58 = vpop.eup %2659 }
 0xe00   : > { %v2368_v59 = vadd.f32 -1.4531521, %v1990_v49  ;;  %v1991_v62 = vmul.f32 1.0614054, %v2660_v58  ;;  %v2662_v17 = vpop.eup %2661 }
 0xe01   : > { %v2664_v21 = vpop.eup %2663 }
 0xe02   : > { %v1994_v63 = vmul.f32 %v2658_v56, %v2368_v59  ;;  %v2369_v0 = vadd.f32 -1.4531521, %v1991_v62  ;;  %v2134_v62 = vsub.s32 6, %v2830_v9 }
 0xe04   : > { %v1996_v1 = vadd.f32 1.4214138, %v1994_v63  ;;  %v1995_v4 = vmul.f32 %v2660_v58, %v2369_v0  ;;  %v2140_v63 = vsub.s32 7, %v2830_v9  ;;  %v2135_v0 = vrot.slane %v2833_v11, %v2134_v62  ;;  %v2669_v9 = vld [vmem:[%s3064_s6] sm:$0xff] (!%p2377_p5)  }
 0xe06   : > { %v1998_v7 = vmul.f32 %v2658_v56, %v1996_v1  ;;  %v1997_v8 = vadd.f32 1.4214138, %v1995_v4  ;;  %v2141_v2 = vrot.slane %v2833_v11, %v2140_v63 }
 0xe08   : > { %v2370_v10 = vadd.f32 -0.28449672, %v1998_v7  ;;  %v1999_v12 = vmul.f32 %v2660_v58, %v1997_v8 }
 0xe0a   : > { %v2002_v5 = vmul.f32 %v2658_v56, %v2370_v10  ;;  %v2371_v13 = vadd.f32 -0.28449672, %v1999_v12 }
 0xe0c   : > { %v2004_v6 = vadd.f32 0.2548296, %v2002_v5  ;;  %v2003_v15 = vmul.f32 %v2660_v58, %v2371_v13 }
 0xe0e   : > { %v2006_v16 = vmul.f32 %v2658_v56, %v2004_v6  ;;  %v2005_v19 = vadd.f32 0.2548296, %v2003_v15  ;;  %v2725_v15 = vmov (!%p2377_p5), 0.0  }
 0xe0f   : > { %2555 = vmatprep.subr.bf16.mxu0 (!%p2377_p5), %v2725_v15  ;;  %2559 = vmatprep.mubr.msk.bf16.mxu0 (!%p2377_p5), %vm2726_vm9, %v2725_v15 }
 0xe10   : > { %v2016_v14 = vmul.f32 %v2662_v17, %v2006_v16  ;;  %v2007_v20 = vmul.f32 %v2660_v58, %v2005_v19  ;;  %2556 = vmatpush3.bf16.msra.mxu0 (!%p2377_p5), %v2669_v9  ;;  %v2670_v16 = vld [vmem:[%s3064_s6 + $0x8] sm:$0xff] (!%p2377_p5)  }
 0xe11   : > { %2557 = vmatprep.subr.bf16.mxu0 (!%p2377_p5), %v2725_v15 }
 0xe12   : > { %v2018_v22 = vsub.f32 1.0, %v2016_v14  ;;  %v2017_v23 = vmul.f32 %v2664_v21, %v2007_v20 }
 0xe14   : > { %v2022_v24 = vsub.f32 0.0, %v2018_v22  ;;  %v2019_v25 = vsub.f32 1.0, %v2017_v23  ;;  %2558 = vmatpush3.bf16.msra.mxu0 (!%p2377_p5), %v2670_v16 }
 0xe16   : > { %v2024_v26 = vsel %vm2020_vm6, %v2018_v22, %v2022_v24  ;;  %v2023_v27 = vsub.f32 0.0, %v2019_v25  ;;  %v2378_v22 = vld [vmem:[%s3065_s7] ss:$0 sm:$0xff] (!%p2377_p5) }
 0xe17   : > { %v2026_v28 = vadd.f32 1.0, %v2024_v26 }
 0xe18   : > { %v2025_v29 = vsel %vm2021_vm7, %v2019_v25, %v2023_v27 }
 0xe19   : > { %v2027_v33 = vadd.f32 1.0, %v2025_v29  ;;  %v2028_v34 = vmul.f32 %v2026_v28, %v1978_v18 }
 0xe1b   : > { %v2029_v35 = vmul.f32 %v2027_v33, %v1979_v30 }
 0xe1d   : > { %v2030_v36 = vpack.c.bf16 %v2029_v35, %v2028_v34 }
 0xe1f   : > { %2552 = vmatmul.mubr.msk.bf16.vlgmr.msra.gmra.mrb[20].mxu1 %vm2059_vm8, %v2030_v36 }
 0xef2   : > { %v2097_v39 = vpop.f32.mrb[20].mxu1 }
 0xef3   : > { %v2098_v40 = vadd.f32 %v2097_v39, %v2034_v38  ;;  %v2553_v42 = vpop.f32.mrb[21].mxu1 }
 0xef4   : > { %v2100_v43 = vpop.f32.mrb[22].mxu1 }
 0xef5   : > { %v2101_v44 = vadd.f32 %v2100_v43, %v2034_v38  ;;  %v2554_v46 = vpop.f32.mrb[23].mxu1  ;;  %v2104_v47 = vadd.f32 %v2098_v40, %v2991_v31 }
 0xef7   : > { %v2106_v41 = vsel %vm419_vm2, %v2104_v47, 0.0  ;;  %v2105_v45 = vadd.f32 %v2101_v44, %v2993_v32 }
 0xef8   : > { %2107 = vadd.xlane.f32.xlu0 %v2106_v41 }
 0xef9   : > { %v2109_v48 = vsel %vm419_vm2, %v2105_v45, 0.0 }
 0xefa   : > { %2110 = vadd.xlane.f32.xlu1 %v2109_v48 }
 0xf85   : > { %v2108_v50 = vpop.xlane.xlu0 %2107 }
 0xf86   : > { %v2112_v52 = vmul.f32 0.03125, %v2108_v50 }
 0xf87   : > { %v2111_v53 = vpop.xlane.xlu1 %2110 }
 0xf88   : > { %v2114_v54 = vsub.f32 %v2104_v47, %v2112_v52  ;;  %v2113_v3 = vmul.f32 0.03125, %v2111_v53 }
 0xf8a   : > { %v2115_v55 = vsub.f32 %v2105_v45, %v2113_v3  ;;  %v2116_v51 = vmul.f32 %v2114_v54, %v2114_v54 }
 0xf8c   : > { %v2118_v56 = vsel %vm419_vm2, %v2116_v51, 0.0  ;;  %v2117_v57 = vmul.f32 %v2115_v55, %v2115_v55 }
 0xf8d   : > { %2119 = vadd.xlane.f32.xlu0 %v2118_v56 }
 0xf8e   : > { %v2121_v31 = vsel %vm419_vm2, %v2117_v57, 0.0 }
 0xf8f   : > { %2122 = vadd.xlane.f32.xlu1 %v2121_v31 }
0x101a   : > { %v2120_v49 = vpop.xlane.xlu0 %2119 }
0x101b   : > { %v2124_v32 = vmul.f32 0.03125, %v2120_v49 }
0x101c   : > { %v2123_v58 = vpop.xlane.xlu1 %2122 }
0x101d   : > { %v2126_v59 = vadd.f32 1e-12, %v2124_v32  ;;  %v2125_v60 = vmul.f32 0.03125, %v2123_v58 }
0x101f   : > { %2665 = vrsqrt.f32 %v2126_v59  ;;  %v2127_v61 = vadd.f32 1e-12, %v2125_v60 }
0x1021   : > { %2667 = vrsqrt.f32 %v2127_v61 }
0x1029   : > { %v2666_v1 = vpop.eup %2665 }
0x102a   : > { %v2130_v4 = vmul.f32 %v2666_v1, %v2114_v54 }
0x102b   : > { %v2668_v7 = vpop.eup %2667 }
0x102c   : > { %v2136_v8 = vmul.f32 %v2135_v0, %v2130_v4  ;;  %v2131_v10 = vmul.f32 %v2668_v7, %v2115_v55  ;;  %2149 = sbr.rel (%p2377_p5) target bundleno = 4370 (0x1112), region = 60 }
0x102e   : > { %v2142_v12 = vadd.f32 %v2141_v2, %v2136_v8  ;;  %v2137_v5 = vmul.f32 %v2135_v0, %v2131_v10 }
0x1030   : > { %2144 = vst.msk [vmem:[#allocation2] sm:$0xff] %vm419_vm2, %v2142_v12  ;;  %v2143_v13 = vadd.f32 %v2141_v2, %v2137_v5  ;;  %v2150_v6 = vpack.c.bf16 (!%p2377_p5), %v2142_v12, %v2142_v12 }
0x1032   : > { %2145 = vst.msk [vmem:[#allocation2 + $0x8] sm:$0xff] %vm419_vm2, %v2143_v13  ;;  %v2151_v11 = vpack.c.bf16 (!%p2377_p5), %v2143_v13, %v2143_v13  ;;  %v2165_v17 = vunpack.c.l.b16 (!%p2377_p5), %v2150_v6 }
0x1034   : > { %v2166_v19 = vunpack.c.l.b16 %v2151_v11 }
0x1036   : > { %v2167_v14 = vrot.slane %v2166_v19, 7 }
0x1038   : > { %v2169_v20 = vsel %vm2168_vm10, %v2167_v14, %v2165_v17 }
0x1039   : > { %v2170_v21 = vpack.c.b16 %v2169_v20, %v2169_v20 }
0x103b   : > { %2560 = vmatmul.mubr.msk.bf16.vlgmr.msra.gmra.mrb[0].mxu0 %vm419_vm2, %v2170_v21 }
0x110e   : > { %v2220_v23 = vpop.f32.mrb[0].mxu0 }
0x110f   : > { %v2221_v24 = vadd.f32 %v2378_v22, %v2220_v23  ;;  %v2561_v25 = vpop.f32.mrb[1].mxu0 }
0x1110   : > { %v2223_v26 = vpop.f32.mrb[2].mxu0 }
0x1111   : > { %2226 = vst [vmem:[#allocation3] sm:$0x3] %v2221_v24  ;;  %v2562_v27 = vpop.f32.mrb[3].mxu0 }
0x1112 PF: > { %p2567_p6 = scmp.eq.s32.totalorder %s2779_s28, 1  ;;  %s2727_s29 = smov [#allocation3]  }
0x1113   : > { %s2234_s9 = sshll.u32 %s2727_s29, 4  ;;  %s2235_s9 = int_to_ptr.vmem [resolvable:$true] %s2234_s9 }
0x1114   : > { %s2671_s12 = scalar_lea.vmem %s2235_s9, 32  ;;  %p2678_p10 = scmp.lt.s32.totalorder %s2235_s9, %s2235_s9 }
0x1115   : > { %p2672_p7 = scmp.ne.s32.totalorder %s2235_s9, %s2671_s12  ;;  %p2679_p11 = scmp.lt.s32.totalorder %s2671_s12, %s2671_s12 }
0x1117   : > { %p2673_p8 = pnand %p2672_p7, %p2567_p6  ;;  %p2680_p12 = por %p2679_p11, %p2678_p10 }
0x1119   : > { %p2674_p9 = pneg %p2673_p8 }
0x111b   : > { %p2681_p13 = pnand %p2680_p12, %p2674_p9 }
0x111d   : > { %2684 = shalt.err (!%p2681_p13)
}
0x111e   : > { %s2685_s16 = scalar_lea.hbm %s3066_s8, 32 }
0x111f   : > { %p2686_p0 = scmp.ne.s32.totalorder %s3066_s8, %s2685_s16  ;;  %p2691_p3 = scmp.lt.u32.totalorder %s2685_s16, %s3066_s8 }
0x1121   : > { %p2687_p1 = pnand %p2686_p0, %p2567_p6 }
0x1123   : > { %p2688_p2 = pneg %p2687_p1 }
0x1125   : > { %p2693_p4 = pnand %p2691_p3, %p2688_p2 }
0x1127   : > { %2696 = shalt.err (!%p2693_p4)
}
0x1128   : > { %2564 = dma.vmem_to_hbm [thread:$0]  (%p2567_p6), %s2235_s9, 32, %s3066_s8, [#allocation4]  }
0x1129   : > { %2702 = dma.done.wait (%p2567_p6), [#allocation4], 32  }
0x112a   : > { %2704 = vsyncadd (%p2567_p6), [#allocation4], 4294967264 }
0x112b PF: > { %s19_s27 = sadd.s32 1, %s2707_s27  }
0x112c   : > { %p16_p5 = scmp.ge.s32.totalorder %s19_s27, 4  }
0x112e   :  { %18 = sbr.rel (!%p16_p5) target bundleno = 1 (0x1), region = 99 }
0x1135   :  { %2247 = vsyncpa [#allocation4], 1 }
0x1136   :  { %2249 = vsyncpa [#allocation4 + $0x1], 1 }

</bundles_post_ra>
